<compile_context>
chip_gen: v7x
topology: tpu7x:2x2x1
jax: 0.10.0
libtpu: 0.0.40
codegen_flags: <defaults>
</compile_context>

<pallas_src>
import functools

import jax
import jax.numpy as jnp
from jax.experimental import pallas as pl
from jax.experimental.pallas import tpu as pltpu

EPS = 1e-5  # PyTorch InstanceNorm2d default eps


# ----------------------------------------------------------------------------
# Fused kernel: ResidualBlock (conv-IN-ReLU, conv-IN, +x, ReLU) + cpm branch
# ----------------------------------------------------------------------------
def _cpm_resblock_kernel(d, c_res, c_cpm,
                         x_ref, cx_ref, w1_ref, w2_ref, wc_ref, mavg_ref,
                         g1_ref, b1_ref, g2_ref, b2_ref, bc_ref,
                         res_ref, cpm_ref, pres_ref, pcpm_ref):
    _, h, wc_r = x_ref.shape              # (1, H, W*C) lane-dense block
    wc_c = cx_ref.shape[2]
    mavg = mavg_ref[...]                  # (W*C, W*C) f32 channel-averaging matrix
    bf16 = jnp.bfloat16

    def inst_norm(y, g_t, b_t):
        # Stats reduced over H first (cheap sublane reduce), then averaged over
        # the W channel copies with one tiny (1,WC)x(WC,WC) matmul.  All f32.
        mean_t = jnp.dot(jnp.sum(y, axis=0, keepdims=True), mavg,
                         preferred_element_type=jnp.float32)
        cen = y - mean_t
        var_t = jnp.dot(jnp.sum(cen * cen, axis=0, keepdims=True), mavg,
                        preferred_element_type=jnp.float32)
        scale = g_t * jax.lax.rsqrt(var_t + EPS)
        return cen * scale + b_t

    def conv3x3(pad_ref, dd, c, wc, w_big_bf16):
        # 9 shifted windows of the zero-padded lane-dense image, concatenated
        # along lanes -> one bf16 MXU matmul with f32 accumulation.
        taps = [pad_ref[pl.ds(kh * dd, h), pl.ds(kw * dd * c, wc)]
                for kh in range(3) for kw in range(3)]
        patches = jnp.concatenate(taps, axis=-1).astype(bf16)   # (H, 9*W*c)
        return jnp.dot(patches, w_big_bf16, preferred_element_type=jnp.float32)

    # ---------------- residual path ----------------
    pres_ref[...] = jnp.zeros_like(pres_ref)                 # pad ring zeroed once
    pres_ref[pl.ds(d, h), pl.ds(d * c_res, wc_r)] = x_ref[0]
    y1 = conv3x3(pres_ref, d, c_res, wc_r, w1_ref[...])
    y1 = jnp.maximum(inst_norm(y1, g1_ref[...], b1_ref[...]), 0.0)

    pres_ref[pl.ds(d, h), pl.ds(d * c_res, wc_r)] = y1        # reuse same pad ring
    y2 = conv3x3(pres_ref, d, c_res, wc_r, w2_ref[...])
    y2 = inst_norm(y2, g2_ref[...], b2_ref[...])
    res_ref[0] = jnp.maximum(x_ref[0] + y2, 0.0).astype(res_ref.dtype)

    # ---------------- cpm path: depthwise3x3 + 1x1 folded into one 3x3 -------
    pcpm_ref[...] = jnp.zeros_like(pcpm_ref)
    pcpm_ref[pl.ds(1, h), pl.ds(c_cpm, wc_c)] = cx_ref[0]
    yc = conv3x3(pcpm_ref, 1, c_cpm, wc_c, wc_ref[...]) + bc_ref[...]
    cpm_ref[0] = jnp.maximum(yc, 0.0).astype(cpm_ref.dtype)


# ----------------------------------------------------------------------------
# One-time constant preparation (cache and reuse across forward calls!)
# ----------------------------------------------------------------------------
def prepare_constants(params, H, W):
    """Builds the folded lane-dense constants once (bf16 MXU weights, f32 rest)."""
    f32, bf16 = jnp.float32, jnp.bfloat16
    eyeW = jnp.eye(W, dtype=f32)
    C = params["w1"].shape[2]

    def block_weight(w_hwio):                                  # (3,3,Cin,Cout)
        return jnp.concatenate(
            [jnp.kron(eyeW, w_hwio[kh, kw].astype(f32))
             for kh in range(3) for kw in range(3)], axis=0)   # (9*W*Cin, W*Cout)

    # cpm: depthwise-3x3 then 1x1 == a single 3x3 conv (exact fold)
    wd = params["wd"].astype(f32)                              # (3,3,1,Ci)
    wp = params["wp"].astype(f32)                              # (Ci, Co)
    wc = wd[:, :, 0, :, None] * wp[None, None, :, :]           # (3,3,Ci,Co)
    bc = params["bd"].reshape(-1).astype(f32) @ wp + params["bp"].reshape(-1).astype(f32)

    tile = lambda v: jnp.tile(v.reshape(-1).astype(f32), W)[None, :]
    return {
        "w1b": block_weight(params["w1"]).astype(bf16),
        "w2b": block_weight(params["w2"]).astype(bf16),
        "wcb": block_weight(wc).astype(bf16),
        "mavg": jnp.kron(jnp.ones((W, W), f32), jnp.eye(C, dtype=f32)) / float(H * W),
        "g1t": tile(params["g1"]), "b1t": tile(params["b1"]),
        "g2t": tile(params["g2"]), "b2t": tile(params["b2"]),
        "bct": jnp.tile(bc, W)[None, :],
    }


# ----------------------------------------------------------------------------
# Lane-dense core forward: (N, H, W*C) in / out.  Keep the surrounding model in
# this layout to avoid NCHW<->lane-dense transposes per call.
# ----------------------------------------------------------------------------
def cpm_residual_block_lane_dense(x2d, cx2d, consts, *, res_c, cpm_in, cpm_out,
                                  dilation=1):
    d = int(dilation)
    f32 = jnp.float32
    N, H, WCr = x2d.shape
    W = WCr // res_c
    WCc = cx2d.shape[2]
    WCo = W * cpm_out
    # Perf note (not correctness): W*C, W*Ci, W*Co should be multiples of 128
    # and d*C a multiple of 8 for fully dense (unmasked) vector stores.

    kernel = functools.partial(_cpm_resblock_kernel, d, res_c, cpm_in)

    def const_spec(arr):
        nd = len(arr.shape)
        idx = lambda n, _nd=nd: (0,) * _nd
        try:  # constants never change across the grid -> single buffer
            return pl.BlockSpec(arr.shape, idx, pipeline_mode=pl.Buffered(1))
        except Exception:  # older/newer BlockSpec without pipeline_mode
            return pl.BlockSpec(arr.shape, idx)

    # ---- VMEM scaling guard (v7x has 64 MiB physical VMEM) ----
    nbytes = lambda a: int(a.size) * a.dtype.itemsize
    const_bytes = sum(nbytes(consts[k]) for k in
                      ("w1b", "w2b", "wcb", "mavg", "g1t", "b1t", "g2t", "b2t", "bct"))
    io_bytes = 2 * 4 * H * (2 * WCr + WCc + WCo)               # double-buffered blocks
    scr_bytes = 4 * ((H + 2 * d) * (WCr + 2 * d * res_c) + (H + 2) * (WCc + 2 * cpm_in))
    vmem_est = const_bytes + io_bytes + scr_bytes
    # TODO(synk): compact (9*Cin,Cout) im2col + row tiling before W grows (W^2 weights).
    assert vmem_est < 48 * 1024 * 1024, "im2col block weights too large for v7x VMEM"
    vmem_limit = int(min(64 * 1024 * 1024, max(32 * 1024 * 1024, 2 * vmem_est)))

    res2d, cpm2d = pl.pallas_call(
        kernel,
        out_shape=(jax.ShapeDtypeStruct((N, H, WCr), f32),
                   jax.ShapeDtypeStruct((N, H, WCo), f32)),
        grid=(N,),
        in_specs=[
            pl.BlockSpec((1, H, WCr), lambda n: (n, 0, 0)),
            pl.BlockSpec((1, H, WCc), lambda n: (n, 0, 0)),
            const_spec(consts["w1b"]), const_spec(consts["w2b"]),
            const_spec(consts["wcb"]), const_spec(consts["mavg"]),
            const_spec(consts["g1t"]), const_spec(consts["b1t"]),
            const_spec(consts["g2t"]), const_spec(consts["b2t"]),
            const_spec(consts["bct"]),
        ],
        out_specs=(pl.BlockSpec((1, H, WCr), lambda n: (n, 0, 0)),
                   pl.BlockSpec((1, H, WCo), lambda n: (n, 0, 0))),
        scratch_shapes=[
            pltpu.VMEM((H + 2 * d, WCr + 2 * d * res_c), f32),   # res pad buffer
            pltpu.VMEM((H + 2, WCc + 2 * cpm_in), f32),          # cpm pad buffer
        ],
        compiler_params=pltpu.CompilerParams(
            dimension_semantics=("parallel",),        # batch axis feeds both v7x TCs
            vmem_limit_bytes=vmem_limit),
    )(x2d, cx2d, consts["w1b"], consts["w2b"], consts["wcb"], consts["mavg"],
      consts["g1t"], consts["b1t"], consts["g2t"], consts["b2t"], consts["bct"])
    return res2d, cpm2d


# ----------------------------------------------------------------------------
# Layout helpers + NCHW drop-in wrapper (parity with the PyTorch module)
# ----------------------------------------------------------------------------
def nchw_to_lane_dense(t):
    n, c, h, w = t.shape
    return jnp.transpose(t, (0, 2, 3, 1)).reshape(n, h, w * c)


def lane_dense_to_nchw(t, c):
    n, h, wc = t.shape
    return jnp.transpose(t.reshape(n, h, wc // c, c), (0, 3, 1, 2))


def cpm_residual_block(conv_x, conv_cpm_x1, conv_cpm_x2, params, dilation=1):
    """NCHW drop-in matching the PyTorch forward.  NOTE: rebuilds the folded
    constants and does layout transposes every call — prefer prepare_constants()
    once + cpm_residual_block_lane_dense for production."""
    cx = conv_cpm_x1 if conv_cpm_x2 is None else jnp.concatenate(
        [conv_cpm_x1, conv_cpm_x2], axis=1)
    _, C, H, W = conv_x.shape
    Ci, Co = cx.shape[1], params["wp"].shape[-1]
    consts = prepare_constants(params, H, W)
    res2d, cpm2d = cpm_residual_block_lane_dense(
        nchw_to_lane_dense(conv_x.astype(jnp.float32)),
        nchw_to_lane_dense(cx.astype(jnp.float32)),
        consts, res_c=C, cpm_in=Ci, cpm_out=Co, dilation=dilation)
    return lane_dense_to_nchw(res2d, C), lane_dense_to_nchw(cpm2d, Co)


# ----------------------------------------------------------------------------
# Deterministic parameter init (shapes follow the PyTorch module __init__)
# ----------------------------------------------------------------------------
def init_params(key, res_c, cpm_in, cpm_out):
    ks = jax.random.split(key, 12)
    f32 = jnp.float32
    return {
        "w1": 0.1 * jax.random.normal(ks[0], (3, 3, res_c, res_c), f32),
        "g1": 1.0 + 0.1 * jax.random.normal(ks[1], (1, res_c), f32),
        "b1": 0.1 * jax.random.normal(ks[2], (1, res_c), f32),
        "w2": 0.1 * jax.random.normal(ks[3], (3, 3, res_c, res_c), f32),
        "g2": 1.0 + 0.1 * jax.random.normal(ks[4], (1, res_c), f32),
        "b2": 0.1 * jax.random.normal(ks[5], (1, res_c), f32),
        "wd": 0.1 * jax.random.normal(ks[6], (3, 3, 1, cpm_in), f32),
        "bd": 0.1 * jax.random.normal(ks[7], (1, cpm_in), f32),
        "wp": 0.1 * jax.random.normal(ks[8], (cpm_in, cpm_out), f32),
        "bp": 0.1 * jax.random.normal(ks[9], (1, cpm_out), f32),
    }


# ----------------------------------------------------------------------------
# Pure-JAX reference (sanity check only)
# ----------------------------------------------------------------------------
def _to_nhwc(t):
    return jnp.transpose(t, (0, 2, 3, 1))


def _to_nchw(t):
    return jnp.transpose(t, (0, 3, 1, 2))


def _conv_ref(x, w, pad, dil=1, groups=1):
    return jax.lax.conv_general_dilated(
        x, w, window_strides=(1, 1), padding=((pad, pad), (pad, pad)),
        rhs_dilation=(dil, dil), dimension_numbers=("NHWC", "HWIO", "NHWC"),
        feature_group_count=groups)


def _instnorm_ref(y, g, b):
    mean = jnp.mean(y, axis=(1, 2), keepdims=True)
    var = jnp.mean((y - mean) ** 2, axis=(1, 2), keepdims=True)
    return (y - mean) * jax.lax.rsqrt(var + EPS) * g.reshape(1, 1, 1, -1) \
        + b.reshape(1, 1, 1, -1)


def reference(conv_x, conv_cpm_x1, conv_cpm_x2, params, dilation=1):
    d = dilation
    x = _to_nhwc(conv_x).astype(jnp.float32)
    y1 = jax.nn.relu(_instnorm_ref(_conv_ref(x, params["w1"], d, d),
                                   params["g1"], params["b1"]))
    y2 = _instnorm_ref(_conv_ref(y1, params["w2"], d, d),
                       params["g2"], params["b2"])
    res = jax.nn.relu(x + y2)

    cx = conv_cpm_x1 if conv_cpm_x2 is None else jnp.concatenate(
        [conv_cpm_x1, conv_cpm_x2], axis=1)
    cx = _to_nhwc(cx).astype(jnp.float32)
    cin = cx.shape[-1]
    c1 = _conv_ref(cx, params["wd"], 1, 1, groups=cin) + params["bd"].reshape(1, 1, 1, -1)
    wp4 = params["wp"].reshape(1, 1, *params["wp"].shape)
    c2 = _conv_ref(c1, wp4, 0, 1) + params["bp"].reshape(1, 1, 1, -1)
    return _to_nchw(res), _to_nchw(jax.nn.relu(c2))


# ----------------------------------------------------------------------------
if __name__ == "__main__":
    # Small shapes consistent with the module (defaults shrunk):
    #   cpm_channal_in = cpm_channal_out = 8, res_channel_num = 8, dilation = 1
    # W*C = 128 keeps the lane dim fully dense; N = 2 keeps both v7x TCs busy.
    N, H, W = 2, 16, 16
    RES_C, CPM_IN, CPM_OUT, DIL = 8, 8, 8, 1

    key = jax.random.PRNGKey(0)
    k_x, k_c, k_p = jax.random.split(key, 3)
    conv_x = jax.random.normal(k_x, (N, RES_C, H, W), jnp.float32)        # NCHW
    conv_cpm_x1 = jax.random.normal(k_c, (N, CPM_IN, H, W), jnp.float32)  # NCHW
    params = init_params(k_p, RES_C, CPM_IN, CPM_OUT)

    # One-time constant prep (cached; reused by every forward call).
    consts = jax.device_put(prepare_constants(params, H, W))

    # Lane-dense inputs (a real model would stay in this layout end-to-end).
    x2d = nchw_to_lane_dense(conv_x)
    cx2d = nchw_to_lane_dense(conv_cpm_x1)

    fwd = jax.jit(functools.partial(
        cpm_residual_block_lane_dense,
        res_c=RES_C, cpm_in=CPM_IN, cpm_out=CPM_OUT, dilation=DIL))
    res2d, cpm2d = fwd(x2d, cx2d, consts)
    jax.block_until_ready((res2d, cpm2d))

    # Sanity check vs pure-JAX f32 reference.  Tolerances reflect bf16 MXU
    # operands (f32 accumulation / stats); an all-f32 path passes at ~1e-4.
    res_y = lane_dense_to_nchw(res2d, RES_C)
    cpm_y = lane_dense_to_nchw(cpm2d, CPM_OUT)
    res_ref, cpm_ref = reference(conv_x, conv_cpm_x1, None, params, DIL)
    assert res_y.shape == (N, RES_C, H, W) and cpm_y.shape == (N, CPM_OUT, H, W)
    assert float(jnp.max(jnp.abs(res_y - res_ref))) < 2.5e-2
    assert float(jnp.max(jnp.abs(cpm_y - cpm_ref))) < 5e-3

    print("KERNEL_OK")
</pallas_src>

<mosaic_0001>
module attributes {stable_mosaic.version = 11 : i64} {
  func.func @_cpm_resblock_kernel(%arg0: i32, %arg1: memref<1x16x128xf32, #tpu.memory_space<vmem>>, %arg2: memref<1x16x128xf32, #tpu.memory_space<vmem>>, %arg3: memref<1152x128xbf16, #tpu.memory_space<vmem>>, %arg4: memref<1152x128xbf16, #tpu.memory_space<vmem>>, %arg5: memref<1152x128xbf16, #tpu.memory_space<vmem>>, %arg6: memref<128x128xf32, #tpu.memory_space<vmem>>, %arg7: memref<1x128xf32, #tpu.memory_space<vmem>>, %arg8: memref<1x128xf32, #tpu.memory_space<vmem>>, %arg9: memref<1x128xf32, #tpu.memory_space<vmem>>, %arg10: memref<1x128xf32, #tpu.memory_space<vmem>>, %arg11: memref<1x128xf32, #tpu.memory_space<vmem>>, %arg12: memref<1x16x128xf32, #tpu.memory_space<vmem>>, %arg13: memref<1x16x128xf32, #tpu.memory_space<vmem>>, %arg14: memref<18x144xf32, #tpu.memory_space<vmem>>, %arg15: memref<18x144xf32, #tpu.memory_space<vmem>>) attributes {dimension_semantics = [#tpu.dimension_semantics<parallel>], iteration_bounds = array<i64: 2>, scalar_prefetch = 0 : i64, scratch_operands = 2 : i64, tpu.core_type = #tpu.core_type<tc>, window_params = [{transform_indices = @transform_0, window_bounds = array<i64: 1, 16, 128>}, {transform_indices = @transform_1, window_bounds = array<i64: 1, 16, 128>}, {pipeline_mode = #tpu.pipeline_mode<synchronous>, transform_indices = @transform_2, window_bounds = array<i64: 1152, 128>}, {pipeline_mode = #tpu.pipeline_mode<synchronous>, transform_indices = @transform_3, window_bounds = array<i64: 1152, 128>}, {pipeline_mode = #tpu.pipeline_mode<synchronous>, transform_indices = @transform_4, window_bounds = array<i64: 1152, 128>}, {pipeline_mode = #tpu.pipeline_mode<synchronous>, transform_indices = @transform_5, window_bounds = array<i64: 128, 128>}, {pipeline_mode = #tpu.pipeline_mode<synchronous>, transform_indices = @transform_6, window_bounds = array<i64: 1, 128>}, {pipeline_mode = #tpu.pipeline_mode<synchronous>, transform_indices = @transform_7, window_bounds = array<i64: 1, 128>}, {pipeline_mode = #tpu.pipeline_mode<synchronous>, transform_indices = @transform_8, window_bounds = array<i64: 1, 128>}, {pipeline_mode = #tpu.pipeline_mode<synchronous>, transform_indices = @transform_9, window_bounds = array<i64: 1, 128>}, {pipeline_mode = #tpu.pipeline_mode<synchronous>, transform_indices = @transform_10, window_bounds = array<i64: 1, 128>}, {transform_indices = @transform_11, window_bounds = array<i64: 1, 16, 128>}, {transform_indices = @transform_12, window_bounds = array<i64: 1, 16, 128>}]} {
    %c0 = arith.constant 0 : index
    %c0_0 = arith.constant 0 : index
    %0 = vector.load %arg6[%c0, %c0_0] : memref<128x128xf32, #tpu.memory_space<vmem>>, vector<128x128xf32>
    %cst = arith.constant 0.000000e+00 : f32
    %1 = vector.broadcast %cst : f32 to vector<18x144xf32>
    %c0_1 = arith.constant 0 : index
    %c0_2 = arith.constant 0 : index
    %2 = vector.load %arg14[%c0_1, %c0_2] : memref<18x144xf32, #tpu.memory_space<vmem>>, vector<18x144xf32>
    tpu.vector_store %arg14[%c0_1, %c0_2], %1 {strides = array<i32>} : memref<18x144xf32, #tpu.memory_space<vmem>>, vector<18x144xf32>,
    %c0_3 = arith.constant 0 : index
    %c0_4 = arith.constant 0 : index
    %c0_5 = arith.constant 0 : index
    %3 = vector.load %arg1[%c0_3, %c0_4, %c0_5] : memref<1x16x128xf32, #tpu.memory_space<vmem>>, vector<1x16x128xf32>
    %4 = vector.shape_cast %3 : vector<1x16x128xf32> to vector<16x128xf32>
    %c1 = arith.constant 1 : index
    %c8 = arith.constant 8 : index
    %5 = vector.load %arg14[%c1, %c8] : memref<18x144xf32, #tpu.memory_space<vmem>>, vector<16x128xf32>
    tpu.vector_store %arg14[%c1, %c8], %4 {strides = array<i32>} : memref<18x144xf32, #tpu.memory_space<vmem>>, vector<16x128xf32>,
    %c0_6 = arith.constant 0 : index
    %c0_7 = arith.constant 0 : index
    %6 = vector.load %arg3[%c0_6, %c0_7] : memref<1152x128xbf16, #tpu.memory_space<vmem>>, vector<1152x128xbf16>
    %c0_8 = arith.constant 0 : index
    %c0_9 = arith.constant 0 : index
    %7 = vector.load %arg14[%c0_8, %c0_9] : memref<18x144xf32, #tpu.memory_space<vmem>>, vector<16x128xf32>
    %c0_10 = arith.constant 0 : index
    %c8_11 = arith.constant 8 : index
    %8 = vector.load %arg14[%c0_10, %c8_11] : memref<18x144xf32, #tpu.memory_space<vmem>>, vector<16x128xf32>
    %c0_12 = arith.constant 0 : index
    %c16 = arith.constant 16 : index
    %9 = vector.load %arg14[%c0_12, %c16] : memref<18x144xf32, #tpu.memory_space<vmem>>, vector<16x128xf32>
    %c1_13 = arith.constant 1 : index
    %c0_14 = arith.constant 0 : index
    %10 = vector.load %arg14[%c1_13, %c0_14] : memref<18x144xf32, #tpu.memory_space<vmem>>, vector<16x128xf32>
    %c1_15 = arith.constant 1 : index
    %c8_16 = arith.constant 8 : index
    %11 = vector.load %arg14[%c1_15, %c8_16] : memref<18x144xf32, #tpu.memory_space<vmem>>, vector<16x128xf32>
    %c1_17 = arith.constant 1 : index
    %c16_18 = arith.constant 16 : index
    %12 = vector.load %arg14[%c1_17, %c16_18] : memref<18x144xf32, #tpu.memory_space<vmem>>, vector<16x128xf32>
    %c2 = arith.constant 2 : index
    %c0_19 = arith.constant 0 : index
    %13 = vector.load %arg14[%c2, %c0_19] : memref<18x144xf32, #tpu.memory_space<vmem>>, vector<16x128xf32>
    %c2_20 = arith.constant 2 : index
    %c8_21 = arith.constant 8 : index
    %14 = vector.load %arg14[%c2_20, %c8_21] : memref<18x144xf32, #tpu.memory_space<vmem>>, vector<16x128xf32>
    %c2_22 = arith.constant 2 : index
    %c16_23 = arith.constant 16 : index
    %15 = vector.load %arg14[%c2_22, %c16_23] : memref<18x144xf32, #tpu.memory_space<vmem>>, vector<16x128xf32>
    %16 = tpu.concatenate %7, %8, %9, %10, %11, %12, %13, %14, %15 in 1 : vector<16x128xf32>, vector<16x128xf32>, vector<16x128xf32>, vector<16x128xf32>, vector<16x128xf32>, vector<16x128xf32>, vector<16x128xf32>, vector<16x128xf32>, vector<16x128xf32> -> vector<16x1152xf32>
    %17 = arith.truncf %16 : vector<16x1152xf32> to vector<16x1152xbf16>
    %cst_24 = arith.constant dense<0.000000e+00> : vector<16x128xf32>
    %18 = tpu.matmul %17, %6, %cst_24 {dimension_numbers = #tpu.dot_dimension_numbers<[1], [0], [0], [1], [0, 0, 1, 1], [], []>} : vector<16x1152xbf16>, vector<1152x128xbf16>, vector<16x128xf32> -> vector<16x128xf32>
    %c0_25 = arith.constant 0 : index
    %c0_26 = arith.constant 0 : index
    %19 = vector.load %arg7[%c0_25, %c0_26] : memref<1x128xf32, #tpu.memory_space<vmem>>, vector<1x128xf32>
    %c0_27 = arith.constant 0 : index
    %c0_28 = arith.constant 0 : index
    %20 = vector.load %arg8[%c0_27, %c0_28] : memref<1x128xf32, #tpu.memory_space<vmem>>, vector<1x128xf32>
    %cst_29 = arith.constant dense<0.000000e+00> : vector<128xf32>
    %21 = vector.multi_reduction <add>, %18, %cst_29 [0] : vector<16x128xf32> to vector<128xf32>
    %22 = vector.shape_cast %21 : vector<128xf32> to vector<1x128xf32>
    %cst_30 = arith.constant dense<0.000000e+00> : vector<1x128xf32>
    %23 = tpu.matmul %22, %0, %cst_30 {dimension_numbers = #tpu.dot_dimension_numbers<[1], [0], [0], [1], [0, 0, 1, 1], [], []>} : vector<1x128xf32>, vector<128x128xf32>, vector<1x128xf32> -> vector<1x128xf32>
    %24 = vector.broadcast %23 : vector<1x128xf32> to vector<16x128xf32>
    %25 = arith.subf %18, %24 : vector<16x128xf32>
    %26 = arith.mulf %25, %25 : vector<16x128xf32>
    %cst_31 = arith.constant dense<0.000000e+00> : vector<128xf32>
    %27 = vector.multi_reduction <add>, %26, %cst_31 [0] : vector<16x128xf32> to vector<128xf32>
    %28 = vector.shape_cast %27 : vector<128xf32> to vector<1x128xf32>
    %cst_32 = arith.constant dense<0.000000e+00> : vector<1x128xf32>
    %29 = tpu.matmul %28, %0, %cst_32 {dimension_numbers = #tpu.dot_dimension_numbers<[1], [0], [0], [1], [0, 0, 1, 1], [], []>} : vector<1x128xf32>, vector<128x128xf32>, vector<1x128xf32> -> vector<1x128xf32>
    %cst_33 = arith.constant 9.99999974E-6 : f32
    %30 = vector.broadcast %cst_33 : f32 to vector<1x128xf32>
    %31 = arith.addf %29, %30 : vector<1x128xf32>
    %32 = math.rsqrt %31 : vector<1x128xf32>
    %33 = arith.mulf %19, %32 : vector<1x128xf32>
    %34 = vector.broadcast %33 : vector<1x128xf32> to vector<16x128xf32>
    %35 = arith.mulf %25, %34 : vector<16x128xf32>
    %36 = vector.broadcast %20 : vector<1x128xf32> to vector<16x128xf32>
    %37 = arith.addf %35, %36 : vector<16x128xf32>
    %cst_34 = arith.constant 0.000000e+00 : f32
    %38 = vector.broadcast %cst_34 : f32 to vector<16x128xf32>
    %39 = arith.maximumf %37, %38 : vector<16x128xf32>
    %c1_35 = arith.constant 1 : index
    %c8_36 = arith.constant 8 : index
    %40 = vector.load %arg14[%c1_35, %c8_36] : memref<18x144xf32, #tpu.memory_space<vmem>>, vector<16x128xf32>
    tpu.vector_store %arg14[%c1_35, %c8_36], %39 {strides = array<i32>} : memref<18x144xf32, #tpu.memory_space<vmem>>, vector<16x128xf32>,
    %c0_37 = arith.constant 0 : index
    %c0_38 = arith.constant 0 : index
    %41 = vector.load %arg4[%c0_37, %c0_38] : memref<1152x128xbf16, #tpu.memory_space<vmem>>, vector<1152x128xbf16>
    %c0_39 = arith.constant 0 : index
    %c0_40 = arith.constant 0 : index
    %42 = vector.load %arg14[%c0_39, %c0_40] : memref<18x144xf32, #tpu.memory_space<vmem>>, vector<16x128xf32>
    %c0_41 = arith.constant 0 : index
    %c8_42 = arith.constant 8 : index
    %43 = vector.load %arg14[%c0_41, %c8_42] : memref<18x144xf32, #tpu.memory_space<vmem>>, vector<16x128xf32>
    %c0_43 = arith.constant 0 : index
    %c16_44 = arith.constant 16 : index
    %44 = vector.load %arg14[%c0_43, %c16_44] : memref<18x144xf32, #tpu.memory_space<vmem>>, vector<16x128xf32>
    %c1_45 = arith.constant 1 : index
    %c0_46 = arith.constant 0 : index
    %45 = vector.load %arg14[%c1_45, %c0_46] : memref<18x144xf32, #tpu.memory_space<vmem>>, vector<16x128xf32>
    %c1_47 = arith.constant 1 : index
    %c8_48 = arith.constant 8 : index
    %46 = vector.load %arg14[%c1_47, %c8_48] : memref<18x144xf32, #tpu.memory_space<vmem>>, vector<16x128xf32>
    %c1_49 = arith.constant 1 : index
    %c16_50 = arith.constant 16 : index
    %47 = vector.load %arg14[%c1_49, %c16_50] : memref<18x144xf32, #tpu.memory_space<vmem>>, vector<16x128xf32>
    %c2_51 = arith.constant 2 : index
    %c0_52 = arith.constant 0 : index
    %48 = vector.load %arg14[%c2_51, %c0_52] : memref<18x144xf32, #tpu.memory_space<vmem>>, vector<16x128xf32>
    %c2_53 = arith.constant 2 : index
    %c8_54 = arith.constant 8 : index
    %49 = vector.load %arg14[%c2_53, %c8_54] : memref<18x144xf32, #tpu.memory_space<vmem>>, vector<16x128xf32>
    %c2_55 = arith.constant 2 : index
    %c16_56 = arith.constant 16 : index
    %50 = vector.load %arg14[%c2_55, %c16_56] : memref<18x144xf32, #tpu.memory_space<vmem>>, vector<16x128xf32>
    %51 = tpu.concatenate %42, %43, %44, %45, %46, %47, %48, %49, %50 in 1 : vector<16x128xf32>, vector<16x128xf32>, vector<16x128xf32>, vector<16x128xf32>, vector<16x128xf32>, vector<16x128xf32>, vector<16x128xf32>, vector<16x128xf32>, vector<16x128xf32> -> vector<16x1152xf32>
    %52 = arith.truncf %51 : vector<16x1152xf32> to vector<16x1152xbf16>
    %cst_57 = arith.constant dense<0.000000e+00> : vector<16x128xf32>
    %53 = tpu.matmul %52, %41, %cst_57 {dimension_numbers = #tpu.dot_dimension_numbers<[1], [0], [0], [1], [0, 0, 1, 1], [], []>} : vector<16x1152xbf16>, vector<1152x128xbf16>, vector<16x128xf32> -> vector<16x128xf32>
    %c0_58 = arith.constant 0 : index
    %c0_59 = arith.constant 0 : index
    %54 = vector.load %arg9[%c0_58, %c0_59] : memref<1x128xf32, #tpu.memory_space<vmem>>, vector<1x128xf32>
    %c0_60 = arith.constant 0 : index
    %c0_61 = arith.constant 0 : index
    %55 = vector.load %arg10[%c0_60, %c0_61] : memref<1x128xf32, #tpu.memory_space<vmem>>, vector<1x128xf32>
    %cst_62 = arith.constant dense<0.000000e+00> : vector<128xf32>
    %56 = vector.multi_reduction <add>, %53, %cst_62 [0] : vector<16x128xf32> to vector<128xf32>
    %57 = vector.shape_cast %56 : vector<128xf32> to vector<1x128xf32>
    %cst_63 = arith.constant dense<0.000000e+00> : vector<1x128xf32>
    %58 = tpu.matmul %57, %0, %cst_63 {dimension_numbers = #tpu.dot_dimension_numbers<[1], [0], [0], [1], [0, 0, 1, 1], [], []>} : vector<1x128xf32>, vector<128x128xf32>, vector<1x128xf32> -> vector<1x128xf32>
    %59 = vector.broadcast %58 : vector<1x128xf32> to vector<16x128xf32>
    %60 = arith.subf %53, %59 : vector<16x128xf32>
    %61 = arith.mulf %60, %60 : vector<16x128xf32>
    %cst_64 = arith.constant dense<0.000000e+00> : vector<128xf32>
    %62 = vector.multi_reduction <add>, %61, %cst_64 [0] : vector<16x128xf32> to vector<128xf32>
    %63 = vector.shape_cast %62 : vector<128xf32> to vector<1x128xf32>
    %cst_65 = arith.constant dense<0.000000e+00> : vector<1x128xf32>
    %64 = tpu.matmul %63, %0, %cst_65 {dimension_numbers = #tpu.dot_dimension_numbers<[1], [0], [0], [1], [0, 0, 1, 1], [], []>} : vector<1x128xf32>, vector<128x128xf32>, vector<1x128xf32> -> vector<1x128xf32>
    %cst_66 = arith.constant 9.99999974E-6 : f32
    %65 = vector.broadcast %cst_66 : f32 to vector<1x128xf32>
    %66 = arith.addf %64, %65 : vector<1x128xf32>
    %67 = math.rsqrt %66 : vector<1x128xf32>
    %68 = arith.mulf %54, %67 : vector<1x128xf32>
    %69 = vector.broadcast %68 : vector<1x128xf32> to vector<16x128xf32>
    %70 = arith.mulf %60, %69 : vector<16x128xf32>
    %71 = vector.broadcast %55 : vector<1x128xf32> to vector<16x128xf32>
    %72 = arith.addf %70, %71 : vector<16x128xf32>
    %c0_67 = arith.constant 0 : index
    %c0_68 = arith.constant 0 : index
    %c0_69 = arith.constant 0 : index
    %73 = vector.load %arg1[%c0_67, %c0_68, %c0_69] : memref<1x16x128xf32, #tpu.memory_space<vmem>>, vector<1x16x128xf32>
    %74 = vector.shape_cast %73 : vector<1x16x128xf32> to vector<16x128xf32>
    %75 = arith.addf %74, %72 : vector<16x128xf32>
    %cst_70 = arith.constant 0.000000e+00 : f32
    %76 = vector.broadcast %cst_70 : f32 to vector<16x128xf32>
    %77 = arith.maximumf %75, %76 : vector<16x128xf32>
    %c0_71 = arith.constant 0 : index
    %c0_72 = arith.constant 0 : index
    %c0_73 = arith.constant 0 : index
    %78 = vector.load %arg12[%c0_71, %c0_72, %c0_73] : memref<1x16x128xf32, #tpu.memory_space<vmem>>, vector<1x16x128xf32>
    %79 = vector.shape_cast %78 : vector<1x16x128xf32> to vector<16x128xf32>
    %80 = vector.shape_cast %77 : vector<16x128xf32> to vector<1x16x128xf32>
    tpu.vector_store %arg12[%c0_71, %c0_72, %c0_73], %80 {strides = array<i32>} : memref<1x16x128xf32, #tpu.memory_space<vmem>>, vector<1x16x128xf32>,
    %cst_74 = arith.constant 0.000000e+00 : f32
    %81 = vector.broadcast %cst_74 : f32 to vector<18x144xf32>
    %c0_75 = arith.constant 0 : index
    %c0_76 = arith.constant 0 : index
    %82 = vector.load %arg15[%c0_75, %c0_76] : memref<18x144xf32, #tpu.memory_space<vmem>>, vector<18x144xf32>
    tpu.vector_store %arg15[%c0_75, %c0_76], %81 {strides = array<i32>} : memref<18x144xf32, #tpu.memory_space<vmem>>, vector<18x144xf32>,
    %c0_77 = arith.constant 0 : index
    %c0_78 = arith.constant 0 : index
    %c0_79 = arith.constant 0 : index
    %83 = vector.load %arg2[%c0_77, %c0_78, %c0_79] : memref<1x16x128xf32, #tpu.memory_space<vmem>>, vector<1x16x128xf32>
    %84 = vector.shape_cast %83 : vector<1x16x128xf32> to vector<16x128xf32>
    %c1_80 = arith.constant 1 : index
    %c8_81 = arith.constant 8 : index
    %85 = vector.load %arg15[%c1_80, %c8_81] : memref<18x144xf32, #tpu.memory_space<vmem>>, vector<16x128xf32>
    tpu.vector_store %arg15[%c1_80, %c8_81], %84 {strides = array<i32>} : memref<18x144xf32, #tpu.memory_space<vmem>>, vector<16x128xf32>,
    %c0_82 = arith.constant 0 : index
    %c0_83 = arith.constant 0 : index
    %86 = vector.load %arg5[%c0_82, %c0_83] : memref<1152x128xbf16, #tpu.memory_space<vmem>>, vector<1152x128xbf16>
    %c0_84 = arith.constant 0 : index
    %c0_85 = arith.constant 0 : index
    %87 = vector.load %arg15[%c0_84, %c0_85] : memref<18x144xf32, #tpu.memory_space<vmem>>, vector<16x128xf32>
    %c0_86 = arith.constant 0 : index
    %c8_87 = arith.constant 8 : index
    %88 = vector.load %arg15[%c0_86, %c8_87] : memref<18x144xf32, #tpu.memory_space<vmem>>, vector<16x128xf32>
    %c0_88 = arith.constant 0 : index
    %c16_89 = arith.constant 16 : index
    %89 = vector.load %arg15[%c0_88, %c16_89] : memref<18x144xf32, #tpu.memory_space<vmem>>, vector<16x128xf32>
    %c1_90 = arith.constant 1 : index
    %c0_91 = arith.constant 0 : index
    %90 = vector.load %arg15[%c1_90, %c0_91] : memref<18x144xf32, #tpu.memory_space<vmem>>, vector<16x128xf32>
    %c1_92 = arith.constant 1 : index
    %c8_93 = arith.constant 8 : index
    %91 = vector.load %arg15[%c1_92, %c8_93] : memref<18x144xf32, #tpu.memory_space<vmem>>, vector<16x128xf32>
    %c1_94 = arith.constant 1 : index
    %c16_95 = arith.constant 16 : index
    %92 = vector.load %arg15[%c1_94, %c16_95] : memref<18x144xf32, #tpu.memory_space<vmem>>, vector<16x128xf32>
    %c2_96 = arith.constant 2 : index
    %c0_97 = arith.constant 0 : index
    %93 = vector.load %arg15[%c2_96, %c0_97] : memref<18x144xf32, #tpu.memory_space<vmem>>, vector<16x128xf32>
    %c2_98 = arith.constant 2 : index
    %c8_99 = arith.constant 8 : index
    %94 = vector.load %arg15[%c2_98, %c8_99] : memref<18x144xf32, #tpu.memory_space<vmem>>, vector<16x128xf32>
    %c2_100 = arith.constant 2 : index
    %c16_101 = arith.constant 16 : index
    %95 = vector.load %arg15[%c2_100, %c16_101] : memref<18x144xf32, #tpu.memory_space<vmem>>, vector<16x128xf32>
    %96 = tpu.concatenate %87, %88, %89, %90, %91, %92, %93, %94, %95 in 1 : vector<16x128xf32>, vector<16x128xf32>, vector<16x128xf32>, vector<16x128xf32>, vector<16x128xf32>, vector<16x128xf32>, vector<16x128xf32>, vector<16x128xf32>, vector<16x128xf32> -> vector<16x1152xf32>
    %97 = arith.truncf %96 : vector<16x1152xf32> to vector<16x1152xbf16>
    %cst_102 = arith.constant dense<0.000000e+00> : vector<16x128xf32>
    %98 = tpu.matmul %97, %86, %cst_102 {dimension_numbers = #tpu.dot_dimension_numbers<[1], [0], [0], [1], [0, 0, 1, 1], [], []>} : vector<16x1152xbf16>, vector<1152x128xbf16>, vector<16x128xf32> -> vector<16x128xf32>
    %c0_103 = arith.constant 0 : index
    %c0_104 = arith.constant 0 : index
    %99 = vector.load %arg11[%c0_103, %c0_104] : memref<1x128xf32, #tpu.memory_space<vmem>>, vector<1x128xf32>
    %100 = vector.broadcast %99 : vector<1x128xf32> to vector<16x128xf32>
    %101 = arith.addf %98, %100 : vector<16x128xf32>
    %cst_105 = arith.constant 0.000000e+00 : f32
    %102 = vector.broadcast %cst_105 : f32 to vector<16x128xf32>
    %103 = arith.maximumf %101, %102 : vector<16x128xf32>
    %c0_106 = arith.constant 0 : index
    %c0_107 = arith.constant 0 : index
    %c0_108 = arith.constant 0 : index
    %104 = vector.load %arg13[%c0_106, %c0_107, %c0_108] : memref<1x16x128xf32, #tpu.memory_space<vmem>>, vector<1x16x128xf32>
    %105 = vector.shape_cast %104 : vector<1x16x128xf32> to vector<16x128xf32>
    %106 = vector.shape_cast %103 : vector<16x128xf32> to vector<1x16x128xf32>
    tpu.vector_store %arg13[%c0_106, %c0_107, %c0_108], %106 {strides = array<i32>} : memref<1x16x128xf32, #tpu.memory_space<vmem>>, vector<1x16x128xf32>,
    return
  }
  func.func @transform_0(%arg0: i32) -> (i32, i32, i32) {
    %c0_i32 = arith.constant 0 : i32
    %c0_i32_0 = arith.constant 0 : i32
    %c0_i32_1 = arith.constant 0 : i32
    return %arg0, %c0_i32, %c0_i32_0 : i32, i32, i32
  }
  func.func @transform_1(%arg0: i32) -> (i32, i32, i32) {
    %c0_i32 = arith.constant 0 : i32
    %c0_i32_0 = arith.constant 0 : i32
    %c0_i32_1 = arith.constant 0 : i32
    return %arg0, %c0_i32, %c0_i32_0 : i32, i32, i32
  }
  func.func @transform_2(%arg0: i32) -> (i32, i32) {
    %c0_i32 = arith.constant 0 : i32
    %c0_i32_0 = arith.constant 0 : i32
    %c0_i32_1 = arith.constant 0 : i32
    return %c0_i32, %c0_i32_0 : i32, i32
  }
  func.func @transform_3(%arg0: i32) -> (i32, i32) {
    %c0_i32 = arith.constant 0 : i32
    %c0_i32_0 = arith.constant 0 : i32
    %c0_i32_1 = arith.constant 0 : i32
    return %c0_i32, %c0_i32_0 : i32, i32
  }
  func.func @transform_4(%arg0: i32) -> (i32, i32) {
    %c0_i32 = arith.constant 0 : i32
    %c0_i32_0 = arith.constant 0 : i32
    %c0_i32_1 = arith.constant 0 : i32
    return %c0_i32, %c0_i32_0 : i32, i32
  }
  func.func @transform_5(%arg0: i32) -> (i32, i32) {
    %c0_i32 = arith.constant 0 : i32
    %c0_i32_0 = arith.constant 0 : i32
    %c0_i32_1 = arith.constant 0 : i32
    return %c0_i32, %c0_i32_0 : i32, i32
  }
  func.func @transform_6(%arg0: i32) -> (i32, i32) {
    %c0_i32 = arith.constant 0 : i32
    %c0_i32_0 = arith.constant 0 : i32
    %c0_i32_1 = arith.constant 0 : i32
    return %c0_i32, %c0_i32_0 : i32, i32
  }
  func.func @transform_7(%arg0: i32) -> (i32, i32) {
    %c0_i32 = arith.constant 0 : i32
    %c0_i32_0 = arith.constant 0 : i32
    %c0_i32_1 = arith.constant 0 : i32
    return %c0_i32, %c0_i32_0 : i32, i32
  }
  func.func @transform_8(%arg0: i32) -> (i32, i32) {
    %c0_i32 = arith.constant 0 : i32
    %c0_i32_0 = arith.constant 0 : i32
    %c0_i32_1 = arith.constant 0 : i32
    return %c0_i32, %c0_i32_0 : i32, i32
  }
  func.func @transform_9(%arg0: i32) -> (i32, i32) {
    %c0_i32 = arith.constant 0 : i32
    %c0_i32_0 = arith.constant 0 : i32
    %c0_i32_1 = arith.constant 0 : i32
    return %c0_i32, %c0_i32_0 : i32, i32
  }
  func.func @transform_10(%arg0: i32) -> (i32, i32) {
    %c0_i32 = arith.constant 0 : i32
    %c0_i32_0 = arith.constant 0 : i32
    %c0_i32_1 = arith.constant 0 : i32
    return %c0_i32, %c0_i32_0 : i32, i32
  }
  func.func @transform_11(%arg0: i32) -> (i32, i32, i32) {
    %c0_i32 = arith.constant 0 : i32
    %c0_i32_0 = arith.constant 0 : i32
    %c0_i32_1 = arith.constant 0 : i32
    return %arg0, %c0_i32, %c0_i32_0 : i32, i32, i32
  }
  func.func @transform_12(%arg0: i32) -> (i32, i32, i32) {
    %c0_i32 = arith.constant 0 : i32
    %c0_i32_0 = arith.constant 0 : i32
    %c0_i32_1 = arith.constant 0 : i32
    return %arg0, %c0_i32, %c0_i32_0 : i32, i32, i32
  }
}

</mosaic_0001>

<bundles_post_ra>
// kernel: cpm_residual_block_lane_dense.1
= control target key start
LH: loop header
LB: loop body
LE: loop exit
PB: predicated region body
PF: predicated region fallthrough
CT: control target
= control target key end

     0   :  { %s6552_s0 = inlined_call_operand.hbm [shape: f32[2,16,128], index: 0, kind: input, shape index: {}]   ;;  %s6553_s1 = inlined_call_operand.hbm [shape: f32[2,16,128], index: 1, kind: input, shape index: {}]   ;;  %s6554_s2 = inlined_call_operand.hbm [shape: bf16[1152,128], index: 2, kind: input, shape index: {}]   ;;  %s6555_s3 = inlined_call_operand.hbm [shape: bf16[1152,128], index: 3, kind: input, shape index: {}]   ;;  %s6556_s4 = inlined_call_operand.hbm [shape: bf16[1152,128], index: 4, kind: input, shape index: {}]   ;;  %s6557_s5 = inlined_call_operand.hbm [shape: f32[128,128], index: 5, kind: input, shape index: {}]   ;;  %s6558_s6 = inlined_call_operand.vmem [shape: f32[1,128], index: 6, kind: input, shape index: {}]   ;;  %s6559_s7 = inlined_call_operand.vmem [shape: f32[1,128], index: 7, kind: input, shape index: {}]   ;;  %s6560_s8 = inlined_call_operand.vmem [shape: f32[1,128], index: 8, kind: input, shape index: {}]   ;;  %s6561_s9 = inlined_call_operand.vmem [shape: f32[1,128], index: 9, kind: input, shape index: {}]   ;;  %s6562_s10 = inlined_call_operand.vmem [shape: f32[1,128], index: 10, kind: input, shape index: {}]   ;;  %s6563_s11 = inlined_call_operand.hbm [shape: f32[2,16,128], index: 11, kind: output, shape index: {0}]   ;;  %s6564_s12 = inlined_call_operand.hbm [shape: f32[2,16,128], index: 12, kind: output, shape index: {1}]  }
   0x1   :  { %6576 = sst [smem:[#allocation27_spill]] %s6552_s0 }
   0x2   :  { %6577 = sst [smem:[#allocation28_spill]] %s6554_s2 }
   0x3   :  { %6578 = sst [smem:[#allocation29_spill]] %s6555_s3 }
   0x4   :  { %6579 = sst [smem:[#allocation30_spill]] %s6561_s9 }
   0x5   :  { %6580 = sst [smem:[#allocation31_spill]] %s6562_s10 }
   0x6   :  { %6581 = sst [smem:[#allocation32_spill]] %s6563_s11 }
   0x7   :  { %6582 = sst [smem:[#allocation33_spill]] %s6564_s12 }
   0x8   :  { %18 = vsyncpa [#allocation5], 0 }
   0x9   :  { %20 = vsyncpa [#allocation5 + $0x1], 0 }
   0xa   :  { %21 = vsyncpa [#allocation8], 0 }
   0xb   :  { %23 = vsyncpa [#allocation8 + $0x1], 0 }
   0xc   :  { %24 = vsyncpa [#allocation11], 0 }
   0xd   :  { %25 = vsyncpa [#allocation14], 0 }
   0xe   :  { %26 = vsyncpa [#allocation6], 0 }
   0xf   :  { %28 = vsyncpa [#allocation6 + $0x1], 0 }
  0x10   :  { %29 = vsyncpa [#allocation17], 0 }
  0x11   :  { %31 = vsyncpa [#allocation17 + $0x1], 0  ;;  %s5752_s21 = smov 0   ;;  %s5754_s22 = smov 0  }
  0x12   :  { %s5756_s23 = smov 0   ;;  %s5758_s24 = smov 0  }
  0x13 LB: > { %6583 = sst [smem:[#allocation25_spill]] %s5654_s21  ;;  %s5773_s25 = sadd.s32 4294967295, %s5666_s24   ;;  %s5666_s24 = sphi %s5758_s24, %s6617_s24   ;;  %s5662_s23 = sphi %s5756_s23, %s6616_s23   ;;  %s5658_s22 = sphi %s5754_s22, %s6615_s22   ;;  %s5654_s21 = sphi %s5752_s21, %s6614_s21  }
  0x14   : > { %s3963_s26 = sadd.s32 4294967294, %s5666_s24   ;;  %p57_p0 = scmp.ne.s32.totalorder %s5658_s22, %s5654_s21 }
  0x15   : > { %p6567_p1 = scmp.eq.s32.totalorder %s5773_s25, 0  ;;  %p302_p3 = scmp.eq.s32.totalorder %s3963_s26, 1 }
  0x16   : > { %p3964_p5 = scmp.ge.s32.totalorder %s5666_s24, 1  ;;  %p335_p7 = scmp.lt.s32.totalorder %s5666_s24, 3 }
  0x17   : > { %p5782_p4 = por %p6567_p1, %p57_p0  ;;  %p5787_p6 = por %p302_p3, %p57_p0 }
  0x18   : > { %p5792_p8 = pnand %p3964_p5, %p335_p7  ;;  %s5668_s30 = smov [#allocation9]  }
  0x19   : > { %s6584_s27 = scalar_select %p5782_p4, 1, 0 }
  0x1a   : > { %s6585_s28 = scalar_select %p5787_p6, 1, 0 }
  0x1b   : > { %s6587_s29 = scalar_select %p5792_p8, 1, 0 }
  0x1c   : > { %6586 = sst [smem:[#allocation26_spill]] %s6585_s28  ;;  %s347_s13 = sshll.u32 %s5668_s30, 4  ;;  %s5796_s13 = int_to_ptr.vmem [resolvable:$true] %s347_s13 }
  0x1d   : > { %p4895_p9 = pneg %p5792_p8  ;;  %s5669_s15 = smov [#allocation10]  }
  0x1e   : > { %s360_s16 = sshll.u32 %s5669_s15, 4  ;;  %s5670_s17 = smov [#allocation12]   ;;  %s5807_s16 = int_to_ptr.vmem [resolvable:$true] %s360_s16 }
  0x1f   : > { %p5803_p11 = pnand %p4895_p9, %p6567_p1  ;;  %s5809_s18 = sshll.u32 %s5670_s17, 4  ;;  %s374_s18 = int_to_ptr.vmem [resolvable:$true] %s5809_s18 }
  0x20   : > { %s6589_s2 = sld [smem:[#allocation28_spill]] }
  0x21   : > { %p5819_p13 = pneg %p5803_p11 }
  0x26   : > { %s5380_s26 = scalar_lea.hbm %s6589_s2, 9216 }
  0x27   : > { %p5381_p12 = scmp.ne.s32.totalorder %s6589_s2, %s5380_s26  ;;  %p5387_p5 = scmp.lt.u32.totalorder %s5380_s26, %s6589_s2 }
  0x29   : > { %p5383_p0 = pnand %p5819_p13, %p5381_p12 }
  0x2b   : > { %p5384_p3 = pneg %p5383_p0 }
  0x2d   : > { %p5389_p7 = pnand %p5387_p5, %p5384_p3 }
  0x2f   : > { %5392 = shalt.err (!%p5389_p7)
}
  0x30   : > { %s5393_s28 = scalar_lea.vmem %s5796_s13, 9216  ;;  %p5401_p2 = scmp.lt.s32.totalorder %s5796_s13, %s5796_s13 }
  0x31   : > { %p5394_p9 = scmp.ne.s32.totalorder %s5796_s13, %s5393_s28  ;;  %p5402_p6 = scmp.lt.s32.totalorder %s5393_s28, %s5393_s28 }
  0x33   : > { %p5396_p10 = pnand %p5394_p9, %p5819_p13  ;;  %p5403_p12 = por %p5402_p6, %p5401_p2 }
  0x35   : > { %p5397_p1 = pneg %p5396_p10 }
  0x37   : > { %p5404_p0 = pnand %p5403_p12, %p5397_p1 }
  0x39   : > { %5407 = shalt.err (!%p5404_p0)
}
  0x3a   : > { %s5671_s19 = smov 64   ;;  %s5672_s20 = smov 4  }
  0x3b   : > { %4898 = dma.hbm_to_vmem [thread:$0]  (!%p5803_p11), %s6589_s2, 9216, %s5796_s13, [#allocation8], %s5671_s19, %s5671_s19, %s5672_s20  }
  0x3c   : > { %s6591_s3 = sld [smem:[#allocation29_spill]] }
  0x42   : > { %s5408_s28 = scalar_lea.hbm %s6591_s3, 9216 }
  0x43   : > { %p5409_p1 = scmp.ne.s32.totalorder %s6591_s3, %s5408_s28  ;;  %p5415_p10 = scmp.lt.u32.totalorder %s5408_s28, %s6591_s3 }
  0x45   : > { %p5411_p2 = pnand %p5409_p1, %p5819_p13 }
  0x47   : > { %p5412_p6 = pneg %p5411_p2 }
  0x49   : > { %p5417_p3 = pnand %p5415_p10, %p5412_p6 }
  0x4b   : > { %5420 = shalt.err (!%p5417_p3)
}
  0x4c   : > { %s5421_s13 = scalar_lea.vmem %s5807_s16, 9216  ;;  %p5429_p12 = scmp.lt.s32.totalorder %s5807_s16, %s5807_s16 }
  0x4d   : > { %p5422_p5 = scmp.ne.s32.totalorder %s5807_s16, %s5421_s13  ;;  %p5430_p0 = scmp.lt.s32.totalorder %s5421_s13, %s5421_s13 }
  0x4f   : > { %p5424_p7 = pnand %p5422_p5, %p5819_p13  ;;  %p5431_p1 = por %p5430_p0, %p5429_p12 }
  0x51   : > { %p5425_p9 = pneg %p5424_p7 }
  0x53   : > { %p5432_p2 = pnand %p5431_p1, %p5425_p9 }
  0x55   : > { %5435 = shalt.err (!%p5432_p2)
}
  0x56   : > { %4901 = dma.hbm_to_vmem [thread:$0]  (!%p5803_p11), %s6591_s3, 9216, %s5807_s16, [#allocation11], %s5671_s19, %s5671_s19, %s5672_s20  }
  0x57   : > { %s5436_s26 = scalar_lea.hbm %s6556_s4, 9216 }
  0x58   : > { %p5437_p6 = scmp.ne.s32.totalorder %s6556_s4, %s5436_s26  ;;  %p5443_p5 = scmp.lt.u32.totalorder %s5436_s26, %s6556_s4 }
  0x5a   : > { %p5439_p10 = pnand %p5437_p6, %p5819_p13 }
  0x5c   : > { %p5440_p3 = pneg %p5439_p10 }
  0x5e   : > { %p5445_p7 = pnand %p5443_p5, %p5440_p3 }
  0x60   : > { %5448 = shalt.err (!%p5445_p7)
}
  0x61   : > { %s5449_s13 = scalar_lea.vmem %s374_s18, 9216  ;;  %p5457_p1 = scmp.lt.s32.totalorder %s374_s18, %s374_s18 }
  0x62   : > { %p5450_p9 = scmp.ne.s32.totalorder %s374_s18, %s5449_s13  ;;  %p5458_p2 = scmp.lt.s32.totalorder %s5449_s13, %s5449_s13 }
  0x64   : > { %p5452_p12 = pnand %p5450_p9, %p5819_p13  ;;  %p5459_p4 = por %p5458_p2, %p5457_p1 }
  0x66   : > { %p5453_p0 = pneg %p5452_p12 }
  0x68   : > { %p5460_p8 = pnand %p5459_p4, %p5453_p0 }
  0x6a   : > { %5463 = shalt.err (!%p5460_p8)
}
  0x6b   : > { %4904 = dma.hbm_to_vmem [thread:$0]  (!%p5803_p11), %s6556_s4, 9216, %s374_s18, [#allocation11], %s5671_s19, %s5671_s19, %s5672_s20  }
  0x6c   : > { %s5673_s10 = smov [#allocation13]   ;;  %s5464_s30 = scalar_lea.hbm %s6557_s5, 2048 }
  0x6d   : > { %s386_s11 = sshll.u32 %s5673_s10, 4  ;;  %p5465_p4 = scmp.ne.s32.totalorder %s6557_s5, %s5464_s30  ;;  %s387_s11 = int_to_ptr.vmem [resolvable:$true] %s386_s11 }
  0x6e   : > { %p5471_p10 = scmp.lt.u32.totalorder %s5464_s30, %s6557_s5 }
  0x6f   : > { %p5467_p8 = pnand %p5465_p4, %p5819_p13 }
  0x71   : > { %p5468_p6 = pneg %p5467_p8 }
  0x73   : > { %p5473_p3 = pnand %p5471_p10, %p5468_p6 }
  0x75   : > { %5476 = shalt.err (!%p5473_p3)
}
  0x76   : > { %s5477_s18 = scalar_lea.vmem %s387_s11, 2048  ;;  %p5485_p12 = scmp.lt.s32.totalorder %s387_s11, %s387_s11 }
  0x77   : > { %p5478_p5 = scmp.ne.s32.totalorder %s387_s11, %s5477_s18  ;;  %p5486_p0 = scmp.lt.s32.totalorder %s5477_s18, %s5477_s18 }
  0x79   : > { %p5480_p7 = pnand %p5478_p5, %p5819_p13  ;;  %p5487_p1 = por %p5486_p0, %p5485_p12 }
  0x7b   : > { %p5481_p9 = pneg %p5480_p7 }
  0x7d   : > { %p5488_p2 = pnand %p5487_p1, %p5481_p9 }
  0x7f   : > { %5491 = shalt.err (!%p5488_p2)
}
  0x80   : > { %s6572_s19 = smov 128   ;;  %s6574_s21 = smov 8  }
  0x81   : > { %4907 = dma.hbm_to_vmem [thread:$0]  (!%p5803_p11), %s6557_s5, 2048, %s387_s11, [#allocation14], %s6572_s19, %s6572_s19, %s6574_s21  }
  0x82   : > { %s5913_s9 = sadd.s32 1, %s5666_s24   ;;  %s44_s12 = sadd.s32 1, %s5662_s23 }
  0x83   : > { %s41_s10 = ssub.s32 %s5666_s24, %s5913_s9  ;;  %p51_p4 = scmp.ne.s32.totalorder %s5662_s23, %s5658_s22 }
  0x84   : > { %p42_p13 = scmp.eq.s32.totalorder %s41_s10, 0  ;;  %p52_p8 = scmp.eq.s32.totalorder %s5666_s24, 0 }
  0x85   : > { %p6592_p10 = scmp.eq.s32.totalorder %s5773_s25, 1  ;;  %p4926_p5 = scmp.lt.s32.totalorder %s5666_s24, 2 }
  0x86   : > { %s5922_s26 = scalar_select %p42_p13, %s5662_s23, %s44_s12  }
  0x87   : > { %p53_p6 = por %p52_p8, %p51_p4  ;;  %p5926_p3 = por %p6592_p10, %p51_p4 }
  0x88   : > { %s415_s30 = sand.u32 1, %s5662_s23   ;;  %s4212_s11 = sshll.u32 %s5666_s24, 8 }
  0x89   : > { %s3970_s15 = sshll.u32 %s415_s30, 4  ;;  %s6594_s0 = sld [smem:[#allocation27_spill]] }
  0x8a   : > { %s419_s18 = scalar_lea.vmem [#allocation4], %s3970_s15  ;;  %p5940_p11 = pnand %p4926_p5, %p53_p6 }
  0x8b   : > { %s426_s20 = sshll.u32 %s419_s18, 4  ;;  %s5947_s17 = scalar_lea.hbm %s6553_s1, %s4212_s11  ;;  %s5938_s20 = int_to_ptr.vmem [resolvable:$true] %s426_s20 }
  0x8c   : > { %s440_s28 = scalar_lea.vmem [#allocation7], %s3970_s15  ;;  %s5951_s21 = scalar_lea.sflag [#allocation5], %s415_s30 }
  0x8d   : > { %s5949_s19 = sshll.u32 %s440_s28, 4  ;;  %p5494_p9 = pneg %p5940_p11  ;;  %s5983_s19 = int_to_ptr.vmem [resolvable:$true] %s5949_s19 }
  0x8f   : > { %s5936_s13 = scalar_lea.hbm %s6594_s0, %s4212_s11  ;;  %s5497_s10 = scalar_lea.hbm %s6594_s0, 512 }
  0x90   : > { %s5492_s18 = scalar_lea.hbm %s5936_s13, 256  ;;  %p5498_p1 = scmp.lt.u32.totalorder %s5936_s13, %s6594_s0 }
  0x91   : > { %p5493_p7 = scmp.ne.s32.totalorder %s5936_s13, %s5492_s18  ;;  %p5499_p2 = scmp.lt.u32.totalorder %s5497_s10, %s5492_s18 }
  0x92   : > { %p5501_p4 = scmp.lt.u32.totalorder %s5492_s18, %s5936_s13 }
  0x93   : > { %p5495_p12 = pnand %p5494_p9, %p5493_p7  ;;  %p5500_p13 = por %p5499_p2, %p5498_p1 }
  0x95   : > { %p5496_p0 = pneg %p5495_p12  ;;  %p5502_p8 = por %p5501_p4, %p5500_p13 }
  0x97   : > { %p5503_p6 = pnand %p5502_p8, %p5496_p0 }
  0x99   : > { %5506 = shalt.err (!%p5503_p6)
}
  0x9a   : > { %s5507_s30 = scalar_lea.vmem %s5938_s20, 256  ;;  %s5676_s2 = smov [#allocation4]  }
  0x9b   : > { %p5508_p10 = scmp.ne.s32.totalorder %s5938_s20, %s5507_s30  ;;  %s5512_s3 = sshll.u32 %s5676_s2, 4  ;;  %s5513_s3 = int_to_ptr.vmem [resolvable:$false] %s5512_s3 }
  0x9c   : > { %s5514_s15 = scalar_lea.vmem %s5513_s3, 512  ;;  %p5515_p12 = scmp.lt.s32.totalorder %s5938_s20, %s5513_s3 }
  0x9d   : > { %p5510_p5 = pnand %p5508_p10, %p5494_p9  ;;  %p5516_p1 = scmp.lt.s32.totalorder %s5514_s15, %s5507_s30 }
  0x9f   : > { %p5511_p7 = pneg %p5510_p5  ;;  %p5517_p2 = por %p5516_p1, %p5515_p12 }
  0xa1   : > { %p5518_p13 = pnand %p5517_p2, %p5511_p7 }
  0xa3   : > { %5521 = shalt.err (!%p5518_p13)
}
  0xa4   : > { %s6596_s28 = smov 8   ;;  %s6597_s18 = smov 128  }
  0xa5   : > { %4911 = dma.hbm_to_vmem [thread:$0]  (!%p5940_p11), %s5936_s13, 256, %s5938_s20, %s5951_s21, %s6597_s18, %s6597_s18, %s6596_s28  }
  0xa6   : > { %s436_s10 = sand.u32 1, %s5666_s24   ;;  %s5522_s11 = scalar_lea.hbm %s5947_s17, 256 }
  0xa7   : > { %s5986_s12 = scalar_lea.sflag [#allocation8], %s436_s10  ;;  %p5523_p0 = scmp.ne.s32.totalorder %s5947_s17, %s5522_s11 }
  0xa8   : > { %s5527_s3 = scalar_lea.hbm %s6553_s1, 512  ;;  %p5528_p6 = scmp.lt.u32.totalorder %s5947_s17, %s6553_s1 }
  0xa9   : > { %p5525_p4 = pnand %p5523_p0, %p5494_p9  ;;  %p5529_p10 = scmp.lt.u32.totalorder %s5527_s3, %s5522_s11 }
  0xaa   : > { %p5531_p7 = scmp.lt.u32.totalorder %s5522_s11, %s5947_s17 }
  0xab   : > { %p5526_p8 = pneg %p5525_p4  ;;  %p5530_p5 = por %p5529_p10, %p5528_p6 }
  0xad   : > { %p5532_p12 = por %p5531_p7, %p5530_p5 }
  0xaf   : > { %p5533_p1 = pnand %p5532_p12, %p5526_p8 }
  0xb1   : > { %5536 = shalt.err (!%p5533_p1)
}
  0xb2   : > { %s5537_s21 = scalar_lea.vmem %s5983_s19, 256  ;;  %s5677_s13 = smov [#allocation7]  }
  0xb3   : > { %p5538_p2 = scmp.ne.s32.totalorder %s5983_s19, %s5537_s21  ;;  %s5542_s20 = sshll.u32 %s5677_s13, 4  ;;  %s5543_s20 = int_to_ptr.vmem [resolvable:$false] %s5542_s20 }
  0xb4   : > { %s5544_s0 = scalar_lea.vmem %s5543_s20, 512  ;;  %p5545_p4 = scmp.lt.s32.totalorder %s5983_s19, %s5543_s20 }
  0xb5   : > { %p5540_p13 = pnand %p5538_p2, %p5494_p9  ;;  %p5546_p6 = scmp.lt.s32.totalorder %s5544_s0, %s5537_s21 }
  0xb7   : > { %p5541_p0 = pneg %p5540_p13  ;;  %p5547_p10 = por %p5546_p6, %p5545_p4 }
  0xb9   : > { %p5548_p5 = pnand %p5547_p10, %p5541_p0 }
  0xbb   : > { %5551 = shalt.err (!%p5548_p5)
}
  0xbc   : > { %4914 = dma.hbm_to_vmem [thread:$0]  (!%p5940_p11), %s5947_s17, 256, %s5983_s19, %s5986_s12, %s6597_s18, %s6597_s18, %s6596_s28  }
  0xbd   : > { %p6598_p9 = scmp.ne.s32.totalorder %s6587_s29, 0 }
  0xbe   : > { %s6018_s10 = sand.u32 (!%p6598_p9), 1, %s5658_s22   ;;  %p6599_p8 = scmp.ne.s32.totalorder (!%p6598_p9), %s6584_s27, 0 }
  0xbf   : > { %459 = sbr.rel (%p6598_p9) target bundleno = 2305 (0x901), region = 64  ;;  %s6021_s11 = sshll.u32 (!%p6598_p9), %s6018_s10, 4 }
  0xc0   : > { %s462_s16 = scalar_lea.sflag (!%p6598_p9), [#allocation5], %s6018_s10  ;;  %s6025_s30 = scalar_lea.vmem (!%p6598_p9), [#allocation4], %s6021_s11 }
  0xc6   : > { %5625 = dma.done.wait (%p6599_p8), %s462_s16, 256  }
  0xc7   : > { %5627 = vsyncadd (%p6599_p8), %s462_s16, 4294967040  ;;  %s470_s29 = sand.u32 1, %s5773_s25   ;;  %s474_s17 = scalar_lea.vmem [#allocation7], %s6021_s11 }
  0xc8   : > { %s471_s19 = scalar_lea.sflag [#allocation8], %s470_s29 }
  0xc9   : > { %5629 = dma.done.wait (%p6599_p8), %s471_s19, 256  }
  0xca   : > { %5631 = vsyncadd (%p6599_p8), %s471_s19, 4294967040  ;;  %p6600_p11 = scmp.eq.s32.totalorder %s5773_s25, 0 }
  0xcc   : > { %5633 = dma.done.wait (%p6600_p11), [#allocation8], 9216   ;;  %p6601_p7 = pmov %p6600_p11 }
  0xce   : > { %5635 = vsyncadd (%p6601_p7), [#allocation8], 4294958080  ;;  %p6602_p12 = pmov %p6601_p7 }
  0xcf   : > { %p6603_p1 = pmov %p6601_p7 }
  0xd0   : > { %5637 = dma.done.wait (%p6602_p12), [#allocation11], 18432  }
  0xd1   : > { %5639 = vsyncadd (%p6603_p1), [#allocation11], 4294948864  ;;  %p6604_p2 = pmov %p6603_p1 }
  0xd2   : > { %p6605_p13 = pmov %p6603_p1 }
  0xd3   : > { %5641 = dma.done.wait (%p6604_p2), [#allocation14], 2048  }
  0xd4   : > { %5643 = vsyncadd (%p6605_p13), [#allocation14], 4294965248  ;;  %vm559_vm0 = vcmask 130048   ;;  %v5678_v0 = vmov 0.0   ;;  %vm564_vm1 = vcmask 123904   ;;  %v566_v1 = vld [vmem:[%s6025_s30] sm:$0xff] }
  0xd5   : > { %558 = vst [vmem:[#allocation2] sm:$0xff] %v5678_v0  ;;  %560 = vst.msk [vmem:[#allocation2 + $0x8] sm:$0xff] %vm559_vm0, %v5678_v0  ;;  %v567_v2 = vld [vmem:[%s6025_s30 + $0x8] sm:$0xff]  ;;  %vm570_vm2 = vcmask 1040384   ;;  %v571_v3 = vrot.slane %v566_v1, 7  ;;  %s5679_s27 = smov 8  }
  0xd6   : > { %561 = vst [vmem:[#allocation2 + $0x10] sm:$0xff] %v5678_v0  ;;  %562 = vst.msk [vmem:[#allocation2 + $0x18] sm:$0xff] %vm559_vm0, %v5678_v0  ;;  %v572_v4 = vrot.slane %v567_v2, 7  ;;  %v5159_v6 = vld [vmem:[#allocation9 + $0x40] sm:$0xff]   ;;  %v5162_v9 = vld [vmem:[#allocation9 + $0x48] sm:$0xff]   ;;  %vm583_vm3 = vcmask 1047617  }
  0xd7   : > { %563 = vst [vmem:[#allocation2 + $0x20] sm:$0x3] %v5678_v0  ;;  %2813 = vst [vmem:[#allocation3] sm:$0xff] %v5678_v0  ;;  %574 = vrot.lane.b32.xlu0 %v571_v3, %s5679_s27  ;;  %v5160_v7 = vld [vmem:[#allocation9] sm:$0xff]   ;;  %4216 = vmatprep.subr.bf16.mxu0 %v5159_v6  ;;  %v5165_v11 = vld [vmem:[#allocation9 + $0xc8] sm:$0xff]   ;;  %vm585_vm4 = vcmask 64513  }
  0xd8   : > { %2814 = vst.msk [vmem:[#allocation3 + $0x8] sm:$0xff] %vm559_vm0, %v5678_v0  ;;  %2815 = vst [vmem:[#allocation3 + $0x10] sm:$0xff] %v5678_v0  ;;  %578 = vrot.lane.b32.xlu1 %v572_v4, %s5679_s27  ;;  %v573_v5 = vsel %vm570_vm2, %v571_v3, %v572_v4  ;;  %v5161_v8 = vld [vmem:[#allocation9 + $0xc0] sm:$0xff]   ;;  %4217 = vmatpush3.bf16.msra.mxu0 %v5160_v7  ;;  %v5164_v12 = vld [vmem:[#allocation9 + $0x8] sm:$0xff]   ;;  %vm591_vm5 = vcmask 1040448   ;;  %vm593_vm6 = vcmask 57344  }
  0xd9   : > { %2816 = vst.msk [vmem:[#allocation3 + $0x18] sm:$0xff] %vm559_vm0, %v5678_v0  ;;  %2817 = vst [vmem:[#allocation3 + $0x20] sm:$0x3] %v5678_v0  ;;  %v5163_v10 = vld [vmem:[#allocation9 + $0x80] sm:$0xff]   ;;  %4238 = vmatprep.subr.bf16.mxu1 %v5161_v8  ;;  %v5167_v13 = vld [vmem:[#allocation9 + $0x88] sm:$0xff]   ;;  %4218 = vmatprep.subr.bf16.mxu0 %v5162_v9  ;;  %vm587_vm7 = vcmask 1047616  }
  0xda   : > { %565 = vst.msk [vmem:[#allocation2 + $0x28] sm:$0x3] %vm564_vm1, %v5678_v0  ;;  %2818 = vst.msk [vmem:[#allocation3 + $0x28] sm:$0x3] %vm564_vm1, %v5678_v0  ;;  %4239 = vmatpush3.bf16.msra.mxu1 %v5163_v10  ;;  %v5166_v14 = vld [vmem:[#allocation9 + $0x50] sm:$0xff]   ;;  %v5170_v17 = vld [vmem:[#allocation9 + $0x58] sm:$0xff]  }
  0xdb   : > { %576 = vrot.lane.b32.xlu0 %v573_v5, %s5679_s27  ;;  %4240 = vmatprep.subr.bf16.mxu1 %v5165_v11  ;;  %v5169_v15 = vld [vmem:[#allocation9 + $0xd0] sm:$0xff]   ;;  %v5173_v19 = vld [vmem:[#allocation9 + $0xd8] sm:$0xff]   ;;  %v5174_v22 = vld [vmem:[#allocation9 + $0x60] sm:$0xff]   ;;  %vm589_vm8 = vcmask 64512   ;;  %s5680_s28 = smov 120   ;;  %vm783_vm9 = vcmask 1046528  }
  0xdc   : > { %v5168_v16 = vld [vmem:[#allocation9 + $0x10] sm:$0xff]   ;;  %4219 = vmatpush3.bf16.msra.mxu0 %v5164_v12  ;;  %v5172_v20 = vld [vmem:[#allocation9 + $0x18] sm:$0xff]   ;;  %v5177_v23 = vld [vmem:[#allocation9 + $0xe0] sm:$0xff]   ;;  %vm824_vm10 = vcmask 1045504   ;;  %s5681_s18 = smov 112   ;;  %vm763_vm11 = vcmask 982016  }
  0xdd   : > { %v5171_v18 = vld [vmem:[#allocation9 + $0x90] sm:$0xff]   ;;  %4220 = vmatprep.subr.bf16.mxu0 %v5166_v14  ;;  %v5175_v21 = vld [vmem:[#allocation9 + $0x98] sm:$0xff]   ;;  %v5176_v24 = vld [vmem:[#allocation9 + $0x20] sm:$0xff]   ;;  %vm776_vm12 = vcmask 916480   ;;  %vm5682_vm13 = vmmov 0   ;;  %s6606_s16 = sld [smem:[#allocation30_spill]] }
  0xde   : > { %4241 = vmatpush3.bf16.msra.mxu1 %v5167_v13  ;;  %v5179_v25 = vld [vmem:[#allocation9 + $0xa0] sm:$0xff]   ;;  %v5178_v26 = vld [vmem:[#allocation9 + $0x68] sm:$0xff]   ;;  %v5182_v29 = vld [vmem:[#allocation9 + $0x70] sm:$0xff]   ;;  %s4214_s29 = sshll.u32 %s5773_s25, 8  ;;  %s533_s19 = scalar_lea.vmem [#allocation15], %s6021_s11 }
  0xdf   : > { %4242 = vmatprep.subr.bf16.mxu1 %v5169_v15  ;;  %v5180_v27 = vld [vmem:[#allocation9 + $0x28] sm:$0xff]   ;;  %v5184_v31 = vld [vmem:[#allocation9 + $0x30] sm:$0xff]   ;;  %v5186_v35 = vld [vmem:[#allocation9 + $0x78] sm:$0xff]   ;;  %s6607_s12 = sld [smem:[#allocation32_spill]]  ;;  %s5684_s15 = smov [#allocation15]  }
  0xe0   : > { %4221 = vmatpush3.bf16.msra.mxu0 %v5168_v16  ;;  %v5181_v28 = vld [vmem:[#allocation9 + $0xe8] sm:$0xff]   ;;  %v5185_v34 = vld [vmem:[#allocation9 + $0xf0] sm:$0xff]   ;;  %v5188_v37 = vld [vmem:[#allocation9 + $0x38] sm:$0xff]   ;;  %s5556_s21 = sshll.u32 %s5684_s15, 4  ;;  %s5557_s21 = int_to_ptr.vmem [resolvable:$false] %s5556_s21 }
  0xe1   : > { %4222 = vmatprep.subr.bf16.mxu0 %v5170_v17  ;;  %v5183_v30 = vld [vmem:[#allocation9 + $0xa8] sm:$0xff]   ;;  %v5187_v36 = vld [vmem:[#allocation9 + $0xb0] sm:$0xff]   ;;  %v5189_v39 = vld [vmem:[#allocation9 + $0xf8] sm:$0xff]   ;;  %s5558_s13 = scalar_lea.vmem %s5557_s21, 512 }
  0xe2   : > { %4243 = vmatpush3.bf16.msra.mxu1 %v5171_v18  ;;  %v5190_v40 = vld [vmem:[#allocation9 + $0xb8] sm:$0xff]   ;;  %v5191_v41 = vld [vmem:[#allocation9 + $0x140] sm:$0xff]  }
  0xe3   : > { %4244 = vmatprep.subr.bf16.mxu1 %v5173_v19  ;;  %v5193_v59 = vld [vmem:[#allocation9 + $0x1c0] sm:$0xff]  }
  0xe4   : > { %4223 = vmatpush3.bf16.msra.mxu0 %v5172_v20 }
  0xe5   : > { %4224 = vmatprep.subr.bf16.mxu0 %v5174_v22  ;;  %s6457_s2 = scalar_lea.hbm %s6607_s12, %s4214_s29 }
  0xe6   : > { %4245 = vmatpush3.bf16.msra.mxu1 %v5175_v21 }
  0xe7   : > { %4246 = vmatprep.subr.bf16.mxu1 %v5177_v23 }
  0xe8   : > { %4225 = vmatpush3.bf16.msra.mxu0 %v5176_v24 }
  0xe9   : > { %4226 = vmatprep.subr.bf16.mxu0 %v5178_v26 }
  0xea   : > { %4247 = vmatpush3.bf16.msra.mxu1 %v5179_v25 }
  0xeb   : > { %4248 = vmatprep.subr.bf16.mxu1 %v5181_v28 }
  0xec   : > { %4227 = vmatpush3.bf16.msra.mxu0 %v5180_v27 }
  0xed   : > { %4228 = vmatprep.subr.bf16.mxu0 %v5182_v29 }
  0xee   : > { %4249 = vmatpush3.bf16.msra.mxu1 %v5183_v30 }
  0xef   : > { %4250 = vmatprep.subr.bf16.mxu1 %v5185_v34 }
  0xf0   : > { %4229 = vmatpush3.bf16.msra.mxu0 %v5184_v31 }
  0xf1   : > { %4230 = vmatprep.subr.bf16.mxu0 %v5186_v35 }
  0xf2   : > { %4251 = vmatpush3.bf16.msra.mxu1 %v5187_v36 }
  0xf3   : > { %4252 = vmatprep.subr.bf16.mxu1 %v5189_v39 }
  0xf4   : > { %4231 = vmatpush3.bf16.msra.mxu0 %v5188_v37  ;;  %v5194_v37 = vld [vmem:[#allocation9 + $0x148] sm:$0xff]  }
  0xf5   : > { %4260 = vmatprep.subr.bf16.mxu0 %v5191_v41 }
  0xf6   : > { %4253 = vmatpush3.bf16.msra.mxu1 %v5190_v40 }
  0xf7   : > { %4282 = vmatprep.subr.bf16.mxu1 %v5193_v59  ;;  %v5202_v59 = vld [vmem:[#allocation9 + $0x158] sm:$0xff]  }
 0x149   : > { %v575_v32 = vpop.permute.xlu0 %574 }
 0x14a   : > { %v579_v33 = vpop.permute.xlu1 %578  ;;  %584 = vst.msk [vmem:[#allocation2] sm:$0xfe] %vm583_vm3, %v575_v32 }
 0x14b   : > { %586 = vst.msk [vmem:[#allocation2 + $0x8] sm:$0xfe] %vm585_vm4, %v575_v32 }
 0x14c   : > { %592 = vst.msk [vmem:[#allocation2 + $0x20] sm:$0x1] %vm591_vm5, %v579_v33 }
 0x14d   : > { %594 = vst.msk [vmem:[#allocation2 + $0x28] sm:$0x1] %vm593_vm6, %v579_v33  ;;  %v577_v38 = vpop.permute.xlu0 %576  ;;  %v5192_v33 = vld [vmem:[#allocation9 + $0x100] sm:$0xff]  }
 0x14e   : > { %588 = vst.msk [vmem:[#allocation2 + $0x10] sm:$0xff] %vm587_vm7, %v577_v38 }
 0x14f   : > { %590 = vst.msk [vmem:[#allocation2 + $0x18] sm:$0xff] %vm589_vm8, %v577_v38 }
 0x151   : > { %v6061_v42 = vld [vmem:[#allocation2] sm:$0xff] }
 0x152   : > { %v741_v43 = vld [vmem:[#allocation2 + $0x8] sm:$0xff]  ;;  %v743_v45 = vld [vmem:[#allocation2] sm:$0xfe] }
 0x153   : > { %v4979_v44 = vpack.i.bf16 %v741_v43, %v6061_v42  ;;  %v744_v46 = vld [vmem:[#allocation2 + $0x20] sm:$0x1]  ;;  %v745_v47 = vld [vmem:[#allocation2 + $0x8] sm:$0xfe]  ;;  %v784_v53 = vrot.slane %v743_v45, 1 }
 0x154   : > { %v787_v48 = vrot.slane %v744_v46, 1  ;;  %v746_v49 = vld [vmem:[#allocation2 + $0x28] sm:$0x1]  ;;  %v748_v50 = vld [vmem:[#allocation2 + $0x20] sm:$0x3]  ;;  %v793_v57 = vrot.slane %v745_v47, 1 }
 0x155   : > { %4980 = vrot.lane.b32.xlu1 %v4979_v44, %s5680_s28  ;;  %v6065_v51 = vld [vmem:[#allocation2 + $0x10] sm:$0xff]  ;;  %v747_v54 = vld [vmem:[#allocation2] sm:$0xfc]  ;;  %v796_v60 = vrot.slane %v746_v49, 1  ;;  %v828_v62 = vrot.slane %v748_v50, 2  ;;  %v5196_v47 = vld [vmem:[#allocation9 + $0x108] sm:$0xff]  }
 0x156   : > { %v742_v52 = vld [vmem:[#allocation2 + $0x18] sm:$0xff]  ;;  %v785_v56 = vrot.slane %v6065_v51, 1  ;;  %v826_v61 = vrot.slane %v6065_v51, 2  ;;  %v825_v2 = vrot.slane %v747_v54, 2  ;;  %v749_v5 = vld [vmem:[#allocation2 + $0x8] sm:$0xfc]  ;;  %v863_v36 = vpack.c.bf16 %v6065_v51, %v6061_v42 }
 0x157   : > { %v4984_v55 = vpack.i.bf16 %v742_v52, %v6065_v51  ;;  %v794_v58 = vrot.slane %v742_v52, 1  ;;  %v750_v6 = vld [vmem:[#allocation2 + $0x28] sm:$0x3]  ;;  %v835_v8 = vrot.slane %v742_v52, 2  ;;  %v834_v12 = vrot.slane %v749_v5, 2  ;;  %v5195_v43 = vld [vmem:[#allocation9 + $0x180] sm:$0xff]  }
 0x158   : > { %v786_v63 = vsel %vm783_vm9, %v784_v53, %v785_v56  ;;  %v788_v0 = vsel %vm783_vm9, %v785_v56, %v787_v48  ;;  %v6076_v7 = vsel %vm824_vm10, %v825_v2, %v826_v61  ;;  %v6080_v10 = vsel %vm824_vm10, %v826_v61, %v828_v62  ;;  %v5197_v48 = vld [vmem:[#allocation9 + $0x1c8] sm:$0xff]   ;;  %v5198_v42 = vld [vmem:[#allocation9 + $0x150] sm:$0xff]   ;;  %v5207_v5 = vld [vmem:[#allocation9 + $0x198] sm:$0xff]  }
 0x159   : > { %4985 = vrot.lane.b32.xlu0 %v4984_v55, %s5680_s28  ;;  %4990 = vrot.lane.b32.xlu1 %v4979_v44, %s5681_s18  ;;  %v795_v1 = vsel %vm783_vm9, %v793_v57, %v794_v58  ;;  %v866_v3 = vpack.c.bf16 %v788_v0, %v786_v63  ;;  %v797_v9 = vsel %vm783_vm9, %v794_v58, %v796_v60  ;;  %v837_v13 = vrot.slane %v750_v6, 2  ;;  %v5199_v53 = vld [vmem:[#allocation9 + $0x188] sm:$0xff]   ;;  %v5200_v57 = vld [vmem:[#allocation9 + $0x110] sm:$0xff]  }
 0x15a   : > { %v4999_v4 = vpack.i.bf16 %v795_v1, %v786_v63  ;;  %v869_v11 = vpack.c.bf16 %v6080_v10, %v6076_v7  ;;  %v5004_v14 = vpack.i.bf16 %v797_v9, %v788_v0  ;;  %v836_v15 = vsel %vm824_vm10, %v834_v12, %v835_v8  ;;  %v5201_v58 = vld [vmem:[#allocation9 + $0x1d0] sm:$0xff]   ;;  %v5204_v0 = vld [vmem:[#allocation9 + $0x118] sm:$0xff]   ;;  %v5208_v12 = vld [vmem:[#allocation9 + $0x120] sm:$0xff]  }
 0x15b   : > { %1377 = vmatprep.mubr.bf16.mxu1 %v866_v3  ;;  %v5019_v16 = vpack.i.bf16 %v836_v15, %v6076_v7  ;;  %v838_v17 = vsel %vm824_vm10, %v835_v8, %v837_v13  ;;  %v5203_v62 = vld [vmem:[#allocation9 + $0x190] sm:$0xff]   ;;  %v5205_v1 = vld [vmem:[#allocation9 + $0x1d8] sm:$0xff]   ;;  %v5209_v13 = vld [vmem:[#allocation9 + $0x1e0] sm:$0xff]  }
 0x15c   : > { %v5024_v18 = vpack.i.bf16 %v838_v17, %v6080_v10  ;;  %v5211_v15 = vld [vmem:[#allocation9 + $0x1a0] sm:$0xff]   ;;  %v5213_v17 = vld [vmem:[#allocation9 + $0x1e8] sm:$0xff]   ;;  %v5229_v10 = vld [vmem:[#allocation9 + $0x230] sm:$0xff]  }
 0x15d   : > { %4995 = vrot.lane.b32.xlu0 %v4984_v55, %s5681_s18  ;;  %5000 = vrot.lane.b32.xlu1 %v4999_v4, %s5681_s18 }
 0x161   : > { %5005 = vrot.lane.b32.xlu0 %v5004_v14, %s5681_s18  ;;  %5010 = vrot.lane.b32.xlu1 %v4999_v4, %s5680_s28  ;;  %v5206_v4 = vld [vmem:[#allocation9 + $0x160] sm:$0xff]  }
 0x165   : > { %5015 = vrot.lane.b32.xlu0 %v5004_v14, %s5680_s28  ;;  %5020 = vrot.lane.b32.xlu1 %v5019_v16, %s5680_s28  ;;  %v5210_v14 = vld [vmem:[#allocation9 + $0x168] sm:$0xff]  }
 0x169   : > { %5025 = vrot.lane.b32.xlu0 %v5024_v18, %s5680_s28  ;;  %5030 = vrot.lane.b32.xlu1 %v5019_v16, %s5681_s18  ;;  %v5212_v16 = vld [vmem:[#allocation9 + $0x128] sm:$0xff]  }
 0x16d   : > { %5035 = vrot.lane.b32.xlu0 %v5024_v18, %s5681_s18  ;;  %v5214_v18 = vld [vmem:[#allocation9 + $0x170] sm:$0xff]  }
 0x1c7   : > { %v4981_v19 = vpop.permute.xlu1 %4980 }
 0x1c8   : > { %v4983_v20 = vunpack.i.h.bf16 %v4981_v19  ;;  %v4982_v21 = vunpack.i.l.bf16 %v4981_v19  ;;  %v5215_v19 = vld [vmem:[#allocation9 + $0x1a8] sm:$0xff]  }
 0x1ca   : > { %v764_v28 = vsel %vm763_vm11, %v4982_v21, %v4983_v20  ;;  %v5216_v20 = vld [vmem:[#allocation9 + $0x130] sm:$0xff]  }
 0x1cb   : > { %v4986_v22 = vpop.permute.xlu0 %4985  ;;  %v4991_v23 = vpop.permute.xlu1 %4990  ;;  %v5217_v21 = vld [vmem:[#allocation9 + $0x1f0] sm:$0xff]  }
 0x1cc   : > { %v4988_v24 = vunpack.i.h.bf16 %v4986_v22  ;;  %v4987_v25 = vunpack.i.l.bf16 %v4986_v22  ;;  %v4993_v26 = vunpack.i.h.bf16 %v4991_v23  ;;  %v4992_v27 = vunpack.i.l.bf16 %v4991_v23  ;;  %v5218_v22 = vld [vmem:[#allocation9 + $0x178] sm:$0xff]  }
 0x1ce   : > { %v765_v29 = vsel %vm763_vm11, %v4987_v25, %v4988_v24  ;;  %v777_v40 = vsel %vm776_vm12, %v4992_v27, %v4993_v26  ;;  %v5219_v25 = vld [vmem:[#allocation9 + $0x1b0] sm:$0xff]  }
 0x1cf   : > { %v4996_v30 = vpop.permute.xlu0 %4995  ;;  %v5001_v31 = vpop.permute.xlu1 %5000  ;;  %v864_v32 = vpack.c.bf16 %v765_v29, %v764_v28  ;;  %v5220_v28 = vld [vmem:[#allocation9 + $0x138] sm:$0xff]  }
 0x1d0   : > { %v4998_v34 = vunpack.i.h.bf16 %v4996_v30  ;;  %v4997_v35 = vunpack.i.l.bf16 %v4996_v30  ;;  %v5003_v38 = vunpack.i.h.bf16 %v5001_v31  ;;  %v5002_v39 = vunpack.i.l.bf16 %v5001_v31  ;;  %v5221_v29 = vld [vmem:[#allocation9 + $0x1f8] sm:$0xff]  }
 0x1d1   : > { %1336 = vmatprep.mubr.bf16.mxu0 %v864_v32  ;;  %v5222_v31 = vld [vmem:[#allocation9 + $0x1b8] sm:$0xff]  }
 0x1d2   : > { %1337 = vmatmul.mubr.bf16.vlgmr.msra.gmra.mrb[0].mxu0 %v863_v36  ;;  %v778_v41 = vsel %vm776_vm12, %v4997_v35, %v4998_v34  ;;  %v818_v51 = vsel %vm776_vm12, %v5002_v39, %v5003_v38  ;;  %v6117_v35 = vld [vmem:[#allocation3] sm:$0xff]  ;;  %v5224_v36 = vld [vmem:[#allocation9 + $0x208] sm:$0xff]   ;;  %v5226_v38 = vld [vmem:[#allocation9 + $0x218] sm:$0xff]  }
 0x1d3   : > { %4261 = vmatpush3.bf16.msra.mxu0 %v5192_v33  ;;  %v5006_v44 = vpop.permute.xlu0 %5005  ;;  %v6103_v45 = vpop.permute.xlu1 %5010  ;;  %v865_v46 = vpack.c.bf16 %v778_v41, %v777_v40  ;;  %v5223_v33 = vld [vmem:[#allocation9 + $0x200] sm:$0xff]   ;;  %v5228_v40 = vld [vmem:[#allocation9 + $0x228] sm:$0xff]  }
 0x1d4   : > { %v5008_v49 = vunpack.i.h.bf16 %v5006_v44  ;;  %v5007_v50 = vunpack.i.l.bf16 %v5006_v44  ;;  %4262 = vmatprep.subr.bf16.mxu0 %v5194_v37  ;;  %v5013_v26 = vunpack.i.h.bf16 %v6103_v45  ;;  %v5012_v27 = vunpack.i.l.bf16 %v6103_v45  ;;  %v5225_v37 = vld [vmem:[#allocation9 + $0x210] sm:$0xff]   ;;  %v5227_v39 = vld [vmem:[#allocation9 + $0x220] sm:$0xff]  }
 0x1d5   : > { %1378 = vmatmul.mubr.bf16.vlgmr.msra.gmra.mrb[0].mxu1 %v865_v46  ;;  %v5230_v46 = vld [vmem:[#allocation9 + $0x238] sm:$0xff]  }
 0x1d6   : > { %4283 = vmatpush3.bf16.msra.mxu1 %v5195_v43  ;;  %v819_v52 = vsel %vm776_vm12, %v5007_v50, %v5008_v49  ;;  %v806_v32 = vsel %vm763_vm11, %v5012_v27, %v5013_v26  ;;  %v542_v50 = vld [vmem:[#allocation13] sm:$0xff] }
 0x1d7   : > { %4263 = vmatpush3.bf16.msra.mxu0 %v5196_v47  ;;  %v6107_v54 = vpop.permute.xlu0 %5015  ;;  %v5021_v55 = vpop.permute.xlu1 %5020  ;;  %4284 = vmatprep.subr.bf16.mxu1 %v5197_v48  ;;  %v868_v56 = vpack.c.bf16 %v819_v52, %v818_v51  ;;  %v544_v51 = vld [vmem:[#allocation13 + $0x10] sm:$0xff]  ;;  %v5683_v52 = vmov 0.0|0.0  }
 0x1d8   : > { %4264 = vmatprep.subr.bf16.mxu0 %v5198_v42  ;;  %v5023_v60 = vunpack.i.h.bf16 %v5021_v55  ;;  %v5022_v61 = vunpack.i.l.bf16 %v5021_v55  ;;  %v5018_v23 = vunpack.i.h.bf16 %v6107_v54  ;;  %v5017_v24 = vunpack.i.l.bf16 %v6107_v54  ;;  %v543_v42 = vld [vmem:[#allocation13 + $0x8] sm:$0xff]  ;;  %v545_v54 = vld [vmem:[#allocation13 + $0x18] sm:$0xff] }
 0x1d9   : > { %1418 = vmatprep.mubr.bf16.mxu0 %v868_v56  ;;  %v6143_v55 = vpack.c.bf16 %v545_v54, %v544_v51  ;;  %v546_v56 = vld [vmem:[#allocation13 + $0x20] sm:$0xff] }
 0x1da   : > { %4285 = vmatpush3.bf16.msra.mxu1 %v5199_v53  ;;  %v847_v6 = vsel %vm763_vm11, %v5022_v61, %v5023_v60  ;;  %v807_v30 = vsel %vm763_vm11, %v5017_v24, %v5018_v23  ;;  %v6139_v53 = vpack.c.bf16 %v543_v42, %v542_v50  ;;  %v549_v60 = vld [vmem:[#allocation13 + $0x38] sm:$0xff] }
 0x1db   : > { %4265 = vmatpush3.bf16.msra.mxu0 %v5200_v57  ;;  %v5026_v63 = vpop.permute.xlu0 %5025  ;;  %4286 = vmatprep.subr.bf16.mxu1 %v5201_v58  ;;  %v867_v34 = vpack.c.bf16 %v807_v30, %v806_v32  ;;  %v547_v57 = vld [vmem:[#allocation13 + $0x28] sm:$0xff] }
 0x1dc   : > { %v5028_v2 = vunpack.i.h.bf16 %v5026_v63  ;;  %v5027_v3 = vunpack.i.l.bf16 %v5026_v63  ;;  %4266 = vmatprep.subr.bf16.mxu0 %v5202_v59  ;;  %v6149_v58 = vpack.c.bf16 %v547_v57, %v546_v56  ;;  %v548_v59 = vld [vmem:[#allocation13 + $0x30] sm:$0xff]  ;;  %v551_v63 = vld [vmem:[#allocation13 + $0x48] sm:$0xff]  ;;  %v1588_v57 = vlaneseq }
 0x1dd   : > { %v6158_v61 = vpack.c.bf16 %v549_v60, %v548_v59 }
 0x1de   : > { %4287 = vmatpush3.bf16.msra.mxu1 %v5203_v62  ;;  %v848_v8 = vsel %vm763_vm11, %v5027_v3, %v5028_v2  ;;  %v550_v62 = vld [vmem:[#allocation13 + $0x40] sm:$0xff]  ;;  %v553_v2 = vld [vmem:[#allocation13 + $0x58] sm:$0xff]  ;;  %v1589_v59 = vshrl.u32 %v1588_v57, 7  ;;  %v5250_v57 = vld [vmem:[#allocation10 + $0x68] sm:$0xff]  }
 0x1df   : > { %4267 = vmatpush3.bf16.msra.mxu0 %v5204_v0  ;;  %4288 = vmatprep.subr.bf16.mxu1 %v5205_v1  ;;  %v870_v9 = vpack.c.bf16 %v848_v8, %v847_v6  ;;  %v5036_v7 = vpop.permute.xlu0 %5035  ;;  %v6164_v0 = vpack.c.bf16 %v551_v63, %v550_v62  ;;  %v552_v1 = vld [vmem:[#allocation13 + $0x50] sm:$0xff] }
 0x1e0   : > { %4268 = vmatprep.subr.bf16.mxu0 %v5206_v4  ;;  %v5038_v41 = vunpack.i.h.bf16 %v5036_v7  ;;  %v5037_v43 = vunpack.i.l.bf16 %v5036_v7  ;;  %v6170_v3 = vpack.c.bf16 %v553_v2, %v552_v1  ;;  %v554_v4 = vld [vmem:[#allocation13 + $0x60] sm:$0xff]  ;;  %v556_v8 = vld [vmem:[#allocation13 + $0x70] sm:$0xff]  ;;  %v6186_v60 = vsub.s32 0, %v1589_v59  ;;  %v5253_v59 = vld [vmem:[#allocation10 + $0xe8] sm:$0xff]  }
 0x1e1   : > { %1459 = vmatprep.mubr.bf16.mxu1 %v870_v9  ;;  %v557_v9 = vld [vmem:[#allocation13 + $0x78] sm:$0xff] }
 0x1e2   : > { %4289 = vmatpush3.bf16.msra.mxu1 %v5207_v5  ;;  %v860_v47 = vsel %vm776_vm12, %v5037_v43, %v5038_v41  ;;  %v555_v5 = vld [vmem:[#allocation13 + $0x68] sm:$0xff] }
 0x1e3   : > { %4269 = vmatpush3.bf16.msra.mxu0 %v5208_v12  ;;  %4290 = vmatprep.subr.bf16.mxu1 %v5209_v13  ;;  %v6176_v6 = vpack.c.bf16 %v555_v5, %v554_v4  ;;  %v6182_v12 = vpack.c.bf16 %v557_v9, %v556_v8 }
 0x1e4   : > { %4270 = vmatprep.subr.bf16.mxu0 %v5210_v14 }
 0x1e6   : > { %4291 = vmatpush3.bf16.msra.mxu1 %v5211_v15 }
 0x1e7   : > { %4271 = vmatpush3.bf16.msra.mxu0 %v5212_v16  ;;  %4292 = vmatprep.subr.bf16.mxu1 %v5213_v17 }
 0x1e8   : > { %4272 = vmatprep.subr.bf16.mxu0 %v5214_v18 }
 0x1ea   : > { %4293 = vmatpush3.bf16.msra.mxu1 %v5215_v19 }
 0x1eb   : > { %4273 = vmatpush3.bf16.msra.mxu0 %v5216_v20  ;;  %4294 = vmatprep.subr.bf16.mxu1 %v5217_v21 }
 0x1ec   : > { %4274 = vmatprep.subr.bf16.mxu0 %v5218_v22 }
 0x1ee   : > { %4295 = vmatpush3.bf16.msra.mxu1 %v5219_v25 }
 0x1ef   : > { %4275 = vmatpush3.bf16.msra.mxu0 %v5220_v28  ;;  %4296 = vmatprep.subr.bf16.mxu1 %v5221_v29 }
 0x1f0   : > { %4575 = vmatprep.subr.bf16.mxu0 %v6117_v35 }
 0x1f2   : > { %1419 = vmatmul.mubr.bf16.vlgmr.msra.gmra.mrb[4].mxu0 %v867_v34  ;;  %4297 = vmatpush3.bf16.msra.mxu1 %v5222_v31 }
 0x1f3   : > { %4576 = vmatpush3.bf16.msra.mxu0 %v5223_v33  ;;  %4591 = vmatprep.mubr.msk.bf16.mxu0 %vm5682_vm13, %v6117_v35 }
 0x1f4   : > { %4577 = vmatprep.subr.bf16.mxu0 %v6117_v35  ;;  %4775 = vmatprep.subr.bf16.mxu1 %v5683_v52 }
 0x1f5   : > { %1460 = vmatmul.mubr.bf16.vlgmr.msra.gmra.mrb[4].mxu1 %v869_v11  ;;  %v5031_v11 = vpop.permute.xlu1 %5030 }
 0x1f6   : > { %4627 = vmatprep.mubr.msk.f32.mxu1 %vm5682_vm13, %v6117_v35  ;;  %v5033_v44 = vunpack.i.h.bf16 %v5031_v11  ;;  %v5032_v45 = vunpack.i.l.bf16 %v5031_v11  ;;  %4777 = vmatpush3.bf16.msra.mxu1 %v6139_v53 }
 0x1f7   : > { %4578 = vmatpush3.bf16.msra.mxu0 %v5224_v36  ;;  %4778 = vmatprep.subr.bf16.mxu1 %v5683_v52 }
 0x1f8   : > { %4579 = vmatprep.subr.bf16.mxu0 %v6117_v35  ;;  %v859_v48 = vsel %vm776_vm12, %v5032_v45, %v5033_v44 }
 0x1f9   : > { %v871_v49 = vpack.c.bf16 %v860_v47, %v859_v48 }
 0x1fa   : > { %4780 = vmatpush3.bf16.msra.mxu1 %v6143_v55 }
 0x1fb   : > { %4580 = vmatpush3.bf16.msra.mxu0 %v5225_v37  ;;  %4781 = vmatprep.subr.bf16.mxu1 %v5683_v52 }
 0x1fc   : > { %4581 = vmatprep.subr.bf16.mxu0 %v6117_v35 }
 0x1fe   : > { %4783 = vmatpush3.bf16.msra.mxu1 %v6149_v58 }
 0x1ff   : > { %4582 = vmatpush3.bf16.msra.mxu0 %v5226_v38  ;;  %4784 = vmatprep.subr.bf16.mxu1 %v5683_v52 }
 0x200   : > { %4583 = vmatprep.subr.bf16.mxu0 %v6117_v35 }
 0x202   : > { %4786 = vmatpush3.bf16.msra.mxu1 %v6158_v61 }
 0x203   : > { %4584 = vmatpush3.bf16.msra.mxu0 %v5227_v39  ;;  %4787 = vmatprep.subr.bf16.mxu1 %v5683_v52 }
 0x204   : > { %4585 = vmatprep.subr.bf16.mxu0 %v6117_v35 }
 0x206   : > { %4789 = vmatpush3.bf16.msra.mxu1 %v6164_v0 }
 0x207   : > { %4586 = vmatpush3.bf16.msra.mxu0 %v5228_v40  ;;  %4790 = vmatprep.subr.bf16.mxu1 %v5683_v52 }
 0x208   : > { %4587 = vmatprep.subr.bf16.mxu0 %v6117_v35 }
 0x20a   : > { %4792 = vmatpush3.bf16.msra.mxu1 %v6170_v3 }
 0x20b   : > { %4588 = vmatpush3.bf16.msra.mxu0 %v5229_v10  ;;  %4793 = vmatprep.subr.bf16.mxu1 %v5683_v52 }
 0x20c   : > { %4589 = vmatprep.subr.bf16.mxu0 %v6117_v35 }
 0x20e   : > { %4795 = vmatpush3.bf16.msra.mxu1 %v6176_v6 }
 0x20f   : > { %4590 = vmatpush3.bf16.msra.mxu0 %v5230_v46  ;;  %4796 = vmatprep.subr.bf16.mxu1 %v5683_v52 }
 0x210   : > { %4799 = vmatprep.subr.bf16.mxu0 %v5683_v52 }
 0x212   : > { %4592 = vmatmul.mubr.bf16.vlgmr.msra.gmra.mrb[8].mxu0 %v871_v49  ;;  %4798 = vmatpush3.bf16.msra.mxu1 %v6182_v12 }
 0x213   : > { %4662 = vmatprep.mubr.msk.f32.mxu0 %vm5682_vm13, %v6117_v35  ;;  %4801 = vmatpush3.bf16.msra.mxu0 %v6139_v53 }
 0x214   : > { %4802 = vmatprep.subr.bf16.mxu0 %v5683_v52 }
 0x217   : > { %4804 = vmatpush3.bf16.msra.mxu0 %v6143_v55 }
 0x218   : > { %4805 = vmatprep.subr.bf16.mxu0 %v5683_v52 }
 0x21b   : > { %4807 = vmatpush3.bf16.msra.mxu0 %v6149_v58 }
 0x21c   : > { %4808 = vmatprep.subr.bf16.mxu0 %v5683_v52 }
 0x21f   : > { %4810 = vmatpush3.bf16.msra.mxu0 %v6158_v61 }
 0x220   : > { %4811 = vmatprep.subr.bf16.mxu0 %v5683_v52 }
 0x223   : > { %4813 = vmatpush3.bf16.msra.mxu0 %v6164_v0 }
 0x224   : > { %4814 = vmatprep.subr.bf16.mxu0 %v5683_v52 }
 0x227   : > { %4816 = vmatpush3.bf16.msra.mxu0 %v6170_v3 }
 0x228   : > { %4817 = vmatprep.subr.bf16.mxu0 %v5683_v52 }
 0x22b   : > { %4819 = vmatpush3.bf16.msra.mxu0 %v6176_v6 }
 0x22c   : > { %4820 = vmatprep.subr.bf16.mxu0 %v5683_v52 }
 0x22f   : > { %4822 = vmatpush3.bf16.msra.mxu0 %v6182_v12 }
 0x2a5   : > { %v4232_v13 = vpop.f32.mrb[0].mxu0 }
 0x2a6   : > { %v4233_v14 = vpop.f32.mrb[1].mxu0 }
 0x2a7   : > { %v4234_v15 = vadd.f32 %v4233_v14, %v4232_v13  ;;  %v4235_v16 = vpop.f32.mrb[2].mxu0 }
 0x2a8   : > { %v4236_v17 = vpop.f32.mrb[3].mxu0  ;;  %v4254_v18 = vpop.f32.mrb[0].mxu1 }
 0x2a9   : > { %v4237_v19 = vadd.f32 %v4236_v17, %v4235_v16  ;;  %v4255_v20 = vpop.f32.mrb[1].mxu1 }
 0x2aa   : > { %v4256_v21 = vadd.f32 %v4255_v20, %v4254_v18  ;;  %v4257_v22 = vpop.f32.mrb[2].mxu1 }
 0x2ab   : > { %v4258_v23 = vpop.f32.mrb[3].mxu1 }
 0x2ac   : > { %v1380_v24 = vadd.f32 %v4256_v21, %v4234_v15  ;;  %v4259_v25 = vadd.f32 %v4258_v23, %v4257_v22  ;;  %v1509_v22 = vld [vmem:[%s6558_s6] sm:$0x1] }
 0x2ae   : > { %v1383_v26 = vadd.f32 %v4259_v25, %v4237_v19 }
 0x2c5   : > { %v4276_v27 = vpop.f32.mrb[4].mxu0 }
 0x2c6   : > { %v4277_v28 = vpop.f32.mrb[5].mxu0 }
 0x2c7   : > { %v4278_v29 = vadd.f32 %v4277_v28, %v4276_v27  ;;  %v4279_v30 = vpop.f32.mrb[6].mxu0 }
 0x2c8   : > { %v4280_v31 = vpop.f32.mrb[7].mxu0  ;;  %v4298_v32 = vpop.f32.mrb[4].mxu1 }
 0x2c9   : > { %v1421_v33 = vadd.f32 %v4278_v29, %v1380_v24  ;;  %v4281_v34 = vadd.f32 %v4280_v31, %v4279_v30  ;;  %v4299_v36 = vpop.f32.mrb[5].mxu1 }
 0x2ca   : > { %v4300_v37 = vadd.f32 %v4299_v36, %v4298_v32  ;;  %v4301_v38 = vpop.f32.mrb[6].mxu1 }
 0x2cb   : > { %v1424_v39 = vadd.f32 %v4281_v34, %v1383_v26  ;;  %v4302_v40 = vpop.f32.mrb[7].mxu1  ;;  %v4057_v26 = vld [vmem:[%s6559_s7] ss:$0 sm:$0xff] }
 0x2cc   : > { %v4303_v7 = vadd.f32 %v4302_v40, %v4301_v38  ;;  %v1462_v10 = vadd.f32 %v4300_v37, %v1421_v33  ;;  %v5231_v37 = vld [vmem:[#allocation10 + $0x40] sm:$0xff]   ;;  %v5234_v40 = vld [vmem:[#allocation10 + $0x48] sm:$0xff]  }
 0x2cd   : > { %v5232_v38 = vld [vmem:[#allocation10] sm:$0xff]   ;;  %4347 = vmatprep.subr.bf16.mxu1 %v5231_v37 }
 0x2ce   : > { %v1465_v11 = vadd.f32 %v4303_v7, %v1424_v39  ;;  %v5233_v39 = vld [vmem:[#allocation10 + $0xc0] sm:$0xff]  }
 0x2cf   : > { %v5235_v7 = vld [vmem:[#allocation10 + $0x80] sm:$0xff]   ;;  %4369 = vmatprep.subr.bf16.mxu0 %v5233_v39 }
 0x2e5   : > { %v1502_v41 = vpop.f32.mrb[8].mxu0 }
 0x2e6   : > { %v1503_v43 = vadd.f32 %v1502_v41, %v1462_v10  ;;  %v4593_v44 = vpop.f32.mrb[9].mxu0  ;;  %v5237_v10 = vld [vmem:[#allocation10 + $0xc8] sm:$0xff]  }
 0x2e7   : > { %v1505_v45 = vpop.f32.mrb[10].mxu0  ;;  %v5239_v41 = vld [vmem:[#allocation10 + $0x88] sm:$0xff]   ;;  %v5241_v44 = vld [vmem:[#allocation10 + $0xd0] sm:$0xff]  }
 0x2e8   : > { %v1506_v46 = vadd.f32 %v1505_v45, %v1465_v11  ;;  %v4594_v47 = vpop.f32.mrb[11].mxu0  ;;  %v5236_v11 = vld [vmem:[#allocation10 + $0x8] sm:$0xff]   ;;  %v5240_v45 = vld [vmem:[#allocation10 + $0x10] sm:$0xff]  }
 0x2e9   : > { %v5242_v47 = vld [vmem:[#allocation10 + $0x58] sm:$0xff]  }
 0x2ea   : > { %v1511_v48 = vadd.f32 %v1506_v46, %v1503_v43 }
 0x2ec   : > { %v1512_v49 = vrot.slane %v1511_v48, 4 }
 0x2ee   : > { %v1513_v50 = vadd.f32 %v1512_v49, %v1511_v48  ;;  %v5245_v48 = vld [vmem:[#allocation10 + $0xd8] sm:$0xff]  }
 0x2ef   : > { %v5244_v49 = vld [vmem:[#allocation10 + $0x18] sm:$0xff]  }
 0x2f0   : > { %v1514_v42 = vrot.slane %v1513_v50, 2 }
 0x2f2   : > { %v1515_v51 = vadd.f32 %v1514_v42, %v1513_v50  ;;  %v5247_v50 = vld [vmem:[#allocation10 + $0x98] sm:$0xff]   ;;  %v5246_v42 = vld [vmem:[#allocation10 + $0x60] sm:$0xff]  }
 0x2f4   : > { %v1516_v54 = vrot.slane %v1515_v51, 1 }
 0x2f6   : > { %v1517_v56 = vadd.f32 %v1516_v54, %v1515_v51  ;;  %v5249_v51 = vld [vmem:[#allocation10 + $0xe0] sm:$0xff]  }
 0x2f7   : > { %v5248_v54 = vld [vmem:[#allocation10 + $0x20] sm:$0xff]  }
 0x2f8   : > { %4628 = vmatmul.mubr.f32.vlgmr.msra.gmra.mrb[8].mxu1 %v1517_v56  ;;  %v5251_v56 = vld [vmem:[#allocation10 + $0xa0] sm:$0xff]  }
 0x2f9   : > { %4348 = vmatpush3.bf16.msra.mxu1 %v5232_v38 }
 0x2fa   : > { %4349 = vmatprep.subr.bf16.mxu1 %v5234_v40 }
 0x2fd   : > { %4350 = vmatpush3.bf16.msra.mxu1 %v5236_v11 }
 0x3cb   : > { %v1584_v62 = vpop.f32.mrb[8].mxu1 }
 0x3cc   : > { %v1591_v63 = vrot.slane %v1584_v62, %v6186_v60  ;;  %v4629_v1 = vpop.f32.mrb[9].mxu1  ;;  %v5252_v62 = vld [vmem:[#allocation10 + $0x28] sm:$0xff]  }
 0x3cd   : > { %v5254_v1 = vld [vmem:[#allocation10 + $0x70] sm:$0xff]  }
 0x3ce   : > { %v1592_v2 = vsub.f32 %v1503_v43, %v1591_v63  ;;  %v1593_v4 = vsub.f32 %v1506_v46, %v1591_v63  ;;  %v5238_v43 = vld [vmem:[#allocation10 + $0x50] sm:$0xff]   ;;  %v5255_v63 = vld [vmem:[#allocation10 + $0xa8] sm:$0xff]  }
 0x3cf   : > { %v5243_v46 = vld [vmem:[#allocation10 + $0x90] sm:$0xff]   ;;  %4351 = vmatprep.subr.bf16.mxu1 %v5238_v43 }
 0x3d0   : > { %v1594_v5 = vmul.f32 %v1592_v2, %v1592_v2  ;;  %v1595_v8 = vmul.f32 %v1593_v4, %v1593_v4  ;;  %4352 = vmatpush3.bf16.msra.mxu1 %v5240_v45 }
 0x3d1   : > { %4353 = vmatprep.subr.bf16.mxu1 %v5242_v47 }
 0x3d2   : > { %v1596_v9 = vadd.f32 %v1595_v8, %v1594_v5  ;;  %v5258_v5 = vld [vmem:[#allocation10 + $0x78] sm:$0xff]   ;;  %v5259_v8 = vld [vmem:[#allocation10 + $0xb0] sm:$0xff]  }
 0x3d4   : > { %v1597_v13 = vrot.slane %v1596_v9, 4  ;;  %4354 = vmatpush3.bf16.msra.mxu1 %v5244_v49 }
 0x3d5   : > { %4355 = vmatprep.subr.bf16.mxu1 %v5246_v42 }
 0x3d6   : > { %v1598_v14 = vadd.f32 %v1597_v13, %v1596_v9  ;;  %v5260_v13 = vld [vmem:[#allocation10 + $0x38] sm:$0xff]  }
 0x3d8   : > { %v1599_v15 = vrot.slane %v1598_v14, 2  ;;  %4356 = vmatpush3.bf16.msra.mxu1 %v5248_v54 }
 0x3d9   : > { %4357 = vmatprep.subr.bf16.mxu1 %v5250_v57 }
 0x3da   : > { %v1600_v16 = vadd.f32 %v1599_v15, %v1598_v14 }
 0x3dc   : > { %v1601_v17 = vrot.slane %v1600_v16, 1  ;;  %4358 = vmatpush3.bf16.msra.mxu1 %v5252_v62 }
 0x3dd   : > { %4359 = vmatprep.subr.bf16.mxu1 %v5254_v1 }
 0x3de   : > { %v1602_v18 = vadd.f32 %v1601_v17, %v1600_v16  ;;  %v5261_v16 = vld [vmem:[#allocation10 + $0xf8] sm:$0xff]  }
 0x3df   : > { %v5262_v17 = vld [vmem:[#allocation10 + $0xb8] sm:$0xff]  }
 0x3e0   : > { %4663 = vmatmul.mubr.f32.vlgmr.msra.gmra.mrb[12].mxu0 %v1602_v18  ;;  %v5263_v18 = vld [vmem:[#allocation10 + $0x140] sm:$0xff]  }
 0x3e1   : > { %4370 = vmatpush3.bf16.msra.mxu0 %v5235_v7 }
 0x3e2   : > { %4371 = vmatprep.subr.bf16.mxu0 %v5237_v10 }
 0x3e5   : > { %4372 = vmatpush3.bf16.msra.mxu0 %v5239_v41 }
 0x3e6   : > { %4373 = vmatprep.subr.bf16.mxu0 %v5241_v44 }
 0x3e9   : > { %4374 = vmatpush3.bf16.msra.mxu0 %v5243_v46 }
 0x3ea   : > { %4375 = vmatprep.subr.bf16.mxu0 %v5245_v48 }
 0x3ed   : > { %4376 = vmatpush3.bf16.msra.mxu0 %v5247_v50 }
 0x3ee   : > { %4377 = vmatprep.subr.bf16.mxu0 %v5249_v51 }
 0x3f1   : > { %4378 = vmatpush3.bf16.msra.mxu0 %v5251_v56 }
 0x3f2   : > { %4379 = vmatprep.subr.bf16.mxu0 %v5253_v59 }
 0x3f5   : > { %4380 = vmatpush3.bf16.msra.mxu0 %v5255_v63 }
 0x4b3   : > { %v1669_v19 = vpop.f32.mrb[12].mxu0 }
 0x4b4   : > { %v1670_v20 = vadd.f32 1e-05, %v1669_v19  ;;  %v4664_v21 = vpop.f32.mrb[13].mxu0  ;;  %v5265_v19 = vld [vmem:[#allocation10 + $0x1c0] sm:$0xff]  }
 0x4b6   : > { %5375 = vrsqrt.f32 %v1670_v20 }
 0x4c0   : > { %v5376_v23 = vpop.eup %5375 }
 0x4c1   : > { %v1674_v24 = vmul.f32 %v5376_v23, %v1509_v22 }
 0x4c3   : > { %v1679_v25 = vrot.slane %v1674_v24, %v6186_v60 }
 0x4c5   : > { %v1681_v27 = vmul.f32 %v1679_v25, %v1592_v2  ;;  %v1682_v28 = vmul.f32 %v1679_v25, %v1593_v4  ;;  %v5256_v2 = vld [vmem:[#allocation10 + $0x30] sm:$0xff]  }
 0x4c6   : > { %4360 = vmatpush3.bf16.msra.mxu1 %v5256_v2  ;;  %v5257_v4 = vld [vmem:[#allocation10 + $0xf0] sm:$0xff]  }
 0x4c7   : > { %v1689_v29 = vadd.f32 %v4057_v26, %v1681_v27  ;;  %v1690_v30 = vadd.f32 %v4057_v26, %v1682_v28  ;;  %4381 = vmatprep.subr.bf16.mxu0 %v5257_v4  ;;  %4361 = vmatprep.subr.bf16.mxu1 %v5258_v5  ;;  %v2819_v2 = vld [vmem:[%s474_s17] sm:$0xff]  ;;  %v2820_v4 = vld [vmem:[%s474_s17 + $0x8] sm:$0xff]  ;;  %s3781_s17 = sshll.u32 %s533_s19, 4  ;;  %s6459_s17 = int_to_ptr.vmem [resolvable:$true] %s3781_s17 }
 0x4c8   : > { %4382 = vmatpush3.bf16.msra.mxu0 %v5259_v8  ;;  %v2823_v5 = vrot.slane %v2819_v2, 7  ;;  %v2824_v8 = vrot.slane %v2820_v4, 7  ;;  %v5277_v2 = vld [vmem:[#allocation10 + $0x1d8] sm:$0xff]   ;;  %s5552_s3 = scalar_lea.vmem %s6459_s17, 256  ;;  %p5559_p10 = scmp.lt.s32.totalorder %s6459_s17, %s5557_s21 }
 0x4c9   : > { %v1691_v31 = vmax.f32 %v1689_v29, 0.0  ;;  %v1692_v32 = vmax.f32 %v1690_v30, 0.0  ;;  %4383 = vmatprep.subr.bf16.mxu0 %v5261_v16  ;;  %p5553_p0 = scmp.ne.s32.totalorder %s6459_s17, %s5552_s3  ;;  %p5560_p5 = scmp.lt.s32.totalorder %s5558_s13, %s5552_s3 }
 0x4ca   : > { %4362 = vmatpush3.bf16.msra.mxu1 %v5260_v13 }
 0x4cb   : > { %v1695_v33 = vrot.slane %v1691_v31, 7  ;;  %v1696_v34 = vrot.slane %v1692_v32, 7  ;;  %4391 = vmatprep.subr.bf16.mxu1 %v5263_v18  ;;  %p5554_p4 = pnand %p5553_p0, %p5926_p3  ;;  %p5561_p9 = por %p5560_p5, %p5559_p10 }
 0x4cc   : > { %4384 = vmatpush3.bf16.msra.mxu0 %v5262_v17 }
 0x4cd   : > { %1698 = vrot.lane.b32.xlu1 %v1695_v33, %s5679_s27  ;;  %v1697_v36 = vsel %vm570_vm2, %v1695_v33, %v1696_v34  ;;  %4413 = vmatprep.subr.bf16.mxu0 %v5265_v19  ;;  %p5555_p6 = pneg %p5554_p4 }
 0x4ce   : > { %1700 = vrot.lane.b32.xlu0 %v1697_v36, %s5679_s27 }
 0x4cf   : > { %p5562_p8 = pnand %p5561_p9, %p5555_p6 }
 0x4d1   : > { %1702 = vrot.lane.b32.xlu1 %v1696_v34, %s5679_s27 }
 0x53f   : > { %v1699_v9 = vpop.permute.xlu1 %1698 }
 0x540   : > { %1707 = vst.msk [vmem:[#allocation2] sm:$0xfe] %vm583_vm3, %v1699_v9  ;;  %v1701_v14 = vpop.permute.xlu0 %1700 }
 0x541   : > { %1708 = vst.msk [vmem:[#allocation2 + $0x8] sm:$0xfe] %vm585_vm4, %v1699_v9  ;;  %v2825_v9 = vsel %vm570_vm2, %v2823_v5, %v2824_v8 }
 0x542   : > { %1709 = vst.msk [vmem:[#allocation2 + $0x10] sm:$0xff] %vm587_vm7, %v1701_v14 }
 0x543   : > { %1710 = vst.msk [vmem:[#allocation2 + $0x18] sm:$0xff] %vm589_vm8, %v1701_v14  ;;  %v1703_v15 = vpop.permute.xlu1 %1702 }
 0x544   : > { %1711 = vst.msk [vmem:[#allocation2 + $0x20] sm:$0x1] %vm591_vm5, %v1703_v15 }
 0x545   : > { %1712 = vst.msk [vmem:[#allocation2 + $0x28] sm:$0x1] %vm593_vm6, %v1703_v15 }
 0x547   : > { %v6206_v20 = vld [vmem:[#allocation2] sm:$0xff] }
 0x548   : > { %v1859_v21 = vld [vmem:[#allocation2 + $0x8] sm:$0xff]  ;;  %v1861_v22 = vld [vmem:[#allocation2] sm:$0xfe] }
 0x549   : > { %v5039_v23 = vpack.i.bf16 %v1859_v21, %v6206_v20  ;;  %v6209_v24 = vld [vmem:[#allocation2 + $0x10] sm:$0xff]  ;;  %v1863_v26 = vld [vmem:[#allocation2 + $0x8] sm:$0xfe]  ;;  %v1899_v28 = vrot.slane %v1861_v22, 1  ;;  %v1865_v31 = vld [vmem:[#allocation2] sm:$0xfc] }
 0x54a   : > { %v1860_v25 = vld [vmem:[#allocation2 + $0x18] sm:$0xff]  ;;  %v1900_v29 = vrot.slane %v6209_v24, 1  ;;  %v1908_v30 = vrot.slane %v1863_v26, 1  ;;  %v1939_v36 = vrot.slane %v1865_v31, 2  ;;  %v1940_v37 = vrot.slane %v6209_v24, 2  ;;  %v5266_v31 = vld [vmem:[#allocation10 + $0x148] sm:$0xff]  }
 0x54b   : > { %v5044_v27 = vpack.i.bf16 %v1860_v25, %v6209_v24  ;;  %5040 = vrot.lane.b32.xlu0 %v5039_v23, %s5680_s28  ;;  %v1909_v32 = vrot.slane %v1860_v25, 1  ;;  %v1862_v33 = vld [vmem:[#allocation2 + $0x20] sm:$0x1]  ;;  %v1977_v38 = vpack.c.bf16 %v6209_v24, %v6206_v20  ;;  %v1867_v45 = vld [vmem:[#allocation2 + $0x8] sm:$0xfc]  ;;  %v1949_v56 = vrot.slane %v1860_v25, 2 }
 0x54c   : > { %v1864_v34 = vld [vmem:[#allocation2 + $0x28] sm:$0x1]  ;;  %v1902_v39 = vrot.slane %v1862_v33, 1  ;;  %v1866_v7 = vld [vmem:[#allocation2 + $0x20] sm:$0x3]  ;;  %v1901_v10 = vsel %vm783_vm9, %v1899_v28, %v1900_v29  ;;  %v6225_v47 = vsel %vm824_vm10, %v1939_v36, %v1940_v37  ;;  %v1948_v54 = vrot.slane %v1867_v45, 2 }
 0x54d   : > { %5045 = vrot.lane.b32.xlu1 %v5044_v27, %s5680_s28  ;;  %v1911_v40 = vrot.slane %v1864_v34, 1  ;;  %v1910_v11 = vsel %vm783_vm9, %v1908_v30, %v1909_v32  ;;  %v1942_v41 = vrot.slane %v1866_v7, 2  ;;  %v1868_v48 = vld [vmem:[#allocation2 + $0x28] sm:$0x3]  ;;  %v5264_v28 = vld [vmem:[#allocation10 + $0x100] sm:$0xff]  }
 0x54e   : > { %v1903_v43 = vsel %vm783_vm9, %v1900_v29, %v1902_v39  ;;  %v5059_v50 = vpack.i.bf16 %v1910_v11, %v1901_v10  ;;  %v1951_v57 = vrot.slane %v1868_v48, 2  ;;  %v1950_v59 = vsel %vm824_vm10, %v1948_v54, %v1949_v56  ;;  %v5267_v36 = vld [vmem:[#allocation10 + $0x180] sm:$0xff]   ;;  %v5269_v11 = vld [vmem:[#allocation10 + $0x1c8] sm:$0xff]   ;;  %v5274_v54 = vld [vmem:[#allocation10 + $0x158] sm:$0xff]  }
 0x54f   : > { %5050 = vrot.lane.b32.xlu0 %v5039_v23, %s5681_s18  ;;  %v1912_v44 = vsel %vm783_vm9, %v1909_v32, %v1911_v40  ;;  %v1980_v46 = vpack.c.bf16 %v1903_v43, %v1901_v10  ;;  %v6228_v49 = vsel %vm824_vm10, %v1940_v37, %v1942_v41  ;;  %v5079_v63 = vpack.i.bf16 %v1950_v59, %v6225_v47  ;;  %v5268_v10 = vld [vmem:[#allocation10 + $0x108] sm:$0xff]  }
 0x550   : > { %v1983_v42 = vpack.c.bf16 %v6228_v49, %v6225_v47  ;;  %v5064_v51 = vpack.i.bf16 %v1912_v44, %v1903_v43  ;;  %v1952_v62 = vsel %vm824_vm10, %v1949_v56, %v1951_v57  ;;  %v5270_v44 = vld [vmem:[#allocation10 + $0x150] sm:$0xff]   ;;  %v5271_v24 = vld [vmem:[#allocation10 + $0x188] sm:$0xff]   ;;  %v5299_v47 = vld [vmem:[#allocation10 + $0x220] sm:$0xff]  }
 0x551   : > { %5055 = vrot.lane.b32.xlu1 %v5044_v27, %s5681_s18  ;;  %2491 = vmatprep.mubr.bf16.mxu0 %v1980_v46  ;;  %v5084_v1 = vpack.i.bf16 %v1952_v62, %v6228_v49  ;;  %v5275_v57 = vld [vmem:[#allocation10 + $0x190] sm:$0xff]   ;;  %v5300_v49 = vld [vmem:[#allocation10 + $0x228] sm:$0xff]  }
 0x553   : > { %5060 = vrot.lane.b32.xlu0 %v5059_v50, %s5681_s18 }
 0x555   : > { %5065 = vrot.lane.b32.xlu1 %v5064_v51, %s5681_s18 }
 0x557   : > { %5070 = vrot.lane.b32.xlu0 %v5059_v50, %s5680_s28  ;;  %v5272_v50 = vld [vmem:[#allocation10 + $0x110] sm:$0xff]  }
 0x559   : > { %5075 = vrot.lane.b32.xlu1 %v5064_v51, %s5680_s28  ;;  %v5273_v51 = vld [vmem:[#allocation10 + $0x1d0] sm:$0xff]  }
 0x55b   : > { %5080 = vrot.lane.b32.xlu0 %v5079_v63, %s5680_s28 }
 0x55d   : > { %5085 = vrot.lane.b32.xlu1 %v5084_v1, %s5680_s28 }
 0x55f   : > { %5090 = vrot.lane.b32.xlu0 %v5079_v63, %s5681_s18 }
 0x561   : > { %5095 = vrot.lane.b32.xlu1 %v5084_v1, %s5681_s18  ;;  %v5276_v1 = vld [vmem:[#allocation10 + $0x118] sm:$0xff]  }
 0x563   : > { %2826 = vrot.lane.b32.xlu0 %v2823_v5, %s5679_s27 }
 0x565   : > { %2828 = vrot.lane.b32.xlu1 %v2825_v9, %s5679_s27 }
 0x567   : > { %2830 = vrot.lane.b32.xlu0 %v2824_v8, %s5679_s27  ;;  %v5278_v8 = vld [vmem:[#allocation10 + $0x160] sm:$0xff]  }
 0x5bd   : > { %v5041_v13 = vpop.permute.xlu0 %5040 }
 0x5be   : > { %v5043_v14 = vunpack.i.h.bf16 %v5041_v13  ;;  %v5042_v15 = vunpack.i.l.bf16 %v5041_v13  ;;  %v5279_v13 = vld [vmem:[#allocation10 + $0x198] sm:$0xff]  }
 0x5bf   : > { %v5046_v16 = vpop.permute.xlu1 %5045 }
 0x5c0   : > { %v5048_v17 = vunpack.i.h.bf16 %v5046_v16  ;;  %v5047_v18 = vunpack.i.l.bf16 %v5046_v16  ;;  %v1881_v19 = vsel %vm763_vm11, %v5042_v15, %v5043_v14  ;;  %v5280_v16 = vld [vmem:[#allocation10 + $0x120] sm:$0xff]  }
 0x5c1   : > { %v5051_v21 = vpop.permute.xlu0 %5050 }
 0x5c2   : > { %v1882_v22 = vsel %vm763_vm11, %v5047_v18, %v5048_v17  ;;  %v5053_v23 = vunpack.i.h.bf16 %v5051_v21  ;;  %v5052_v25 = vunpack.i.l.bf16 %v5051_v21  ;;  %v5281_v17 = vld [vmem:[#allocation10 + $0x1e0] sm:$0xff]   ;;  %v5282_v18 = vld [vmem:[#allocation10 + $0x168] sm:$0xff]  }
 0x5c3   : > { %v5056_v26 = vpop.permute.xlu1 %5055  ;;  %v1978_v27 = vpack.c.bf16 %v1882_v22, %v1881_v19  ;;  %v5283_v19 = vld [vmem:[#allocation10 + $0x1a0] sm:$0xff]   ;;  %v5284_v21 = vld [vmem:[#allocation10 + $0x128] sm:$0xff]  }
 0x5c4   : > { %v5058_v29 = vunpack.i.h.bf16 %v5056_v26  ;;  %v5057_v30 = vunpack.i.l.bf16 %v5056_v26  ;;  %v1893_v32 = vsel %vm776_vm12, %v5052_v25, %v5053_v23  ;;  %v5285_v22 = vld [vmem:[#allocation10 + $0x1e8] sm:$0xff]   ;;  %v5286_v23 = vld [vmem:[#allocation10 + $0x170] sm:$0xff]  }
 0x5c5   : > { %2450 = vmatprep.mubr.bf16.mxu1 %v1978_v27  ;;  %v5061_v34 = vpop.permute.xlu0 %5060  ;;  %v5287_v25 = vld [vmem:[#allocation10 + $0x1a8] sm:$0xff]   ;;  %v5288_v26 = vld [vmem:[#allocation10 + $0x130] sm:$0xff]  }
 0x5c6   : > { %v1894_v33 = vsel %vm776_vm12, %v5057_v30, %v5058_v29  ;;  %2451 = vmatmul.mubr.bf16.vlgmr.msra.gmra.mrb[12].mxu1 %v1977_v38  ;;  %v5063_v39 = vunpack.i.h.bf16 %v5061_v34  ;;  %v5062_v40 = vunpack.i.l.bf16 %v5061_v34  ;;  %v5289_v27 = vld [vmem:[#allocation10 + $0x1f0] sm:$0xff]   ;;  %v5292_v34 = vld [vmem:[#allocation10 + $0x138] sm:$0xff]  }
 0x5c7   : > { %v1979_v37 = vpack.c.bf16 %v1894_v33, %v1893_v32  ;;  %4392 = vmatpush3.bf16.msra.mxu1 %v5264_v28  ;;  %v5066_v7 = vpop.permute.xlu1 %5065  ;;  %v5290_v28 = vld [vmem:[#allocation10 + $0x178] sm:$0xff]   ;;  %v5291_v33 = vld [vmem:[#allocation10 + $0x1b0] sm:$0xff]  }
 0x5c8   : > { %v5068_v41 = vunpack.i.h.bf16 %v5066_v7  ;;  %v5067_v43 = vunpack.i.l.bf16 %v5066_v7  ;;  %4393 = vmatprep.subr.bf16.mxu1 %v5266_v31  ;;  %v1933_v45 = vsel %vm776_vm12, %v5062_v40, %v5063_v39  ;;  %v5294_v40 = vld [vmem:[#allocation10 + $0x1b8] sm:$0xff]   ;;  %v5295_v7 = vld [vmem:[#allocation10 + $0x200] sm:$0xff]  }
 0x5c9   : > { %2492 = vmatmul.mubr.bf16.vlgmr.msra.gmra.mrb[16].mxu0 %v1979_v37  ;;  %v6260_v46 = vpop.permute.xlu0 %5070 }
 0x5ca   : > { %4414 = vmatpush3.bf16.msra.mxu0 %v5267_v36  ;;  %v1934_v20 = vsel %vm776_vm12, %v5067_v43, %v5068_v41  ;;  %v5073_v29 = vunpack.i.h.bf16 %v6260_v46  ;;  %v5072_v30 = vunpack.i.l.bf16 %v6260_v46  ;;  %v5293_v36 = vld [vmem:[#allocation10 + $0x1f8] sm:$0xff]   ;;  %v5297_v41 = vld [vmem:[#allocation10 + $0x210] sm:$0xff]  }
 0x5cb   : > { %4394 = vmatpush3.bf16.msra.mxu1 %v5268_v10  ;;  %v6263_v38 = vpop.permute.xlu1 %5075  ;;  %4415 = vmatprep.subr.bf16.mxu0 %v5269_v11  ;;  %v1982_v48 = vpack.c.bf16 %v1934_v20, %v1933_v45  ;;  %v5296_v11 = vld [vmem:[#allocation10 + $0x208] sm:$0xff]   ;;  %v5298_v43 = vld [vmem:[#allocation10 + $0x218] sm:$0xff]   ;;  %v5301_v45 = vld [vmem:[#allocation10 + $0x230] sm:$0xff]  }
 0x5cc   : > { %4395 = vmatprep.subr.bf16.mxu1 %v5270_v44  ;;  %v5078_v31 = vunpack.i.h.bf16 %v6263_v38  ;;  %v5077_v32 = vunpack.i.l.bf16 %v6263_v38  ;;  %v1921_v37 = vsel %vm763_vm11, %v5072_v30, %v5073_v29 }
 0x5cd   : > { %2532 = vmatprep.mubr.bf16.mxu1 %v1982_v48  ;;  %v5081_v56 = vpop.permute.xlu0 %5080  ;;  %v5302_v48 = vld [vmem:[#allocation10 + $0x238] sm:$0xff]  }
 0x5ce   : > { %4416 = vmatpush3.bf16.msra.mxu0 %v5271_v24  ;;  %v5083_v59 = vunpack.i.h.bf16 %v5081_v56  ;;  %v5082_v62 = vunpack.i.l.bf16 %v5081_v56  ;;  %v1922_v39 = vsel %vm763_vm11, %v5077_v32, %v5078_v31 }
 0x5cf   : > { %4396 = vmatpush3.bf16.msra.mxu1 %v5272_v50  ;;  %v5086_v63 = vpop.permute.xlu1 %5085  ;;  %4417 = vmatprep.subr.bf16.mxu0 %v5273_v51  ;;  %v1981_v10 = vpack.c.bf16 %v1922_v39, %v1921_v37 }
 0x5d0   : > { %v5088_v4 = vunpack.i.h.bf16 %v5086_v63  ;;  %v5087_v5 = vunpack.i.l.bf16 %v5086_v63  ;;  %4397 = vmatprep.subr.bf16.mxu1 %v5274_v54  ;;  %v1961_v9 = vsel %vm763_vm11, %v5082_v62, %v5083_v59 }
 0x5d2   : > { %4418 = vmatpush3.bf16.msra.mxu0 %v5275_v57  ;;  %v1962_v14 = vsel %vm763_vm11, %v5087_v5, %v5088_v4 }
 0x5d3   : > { %4398 = vmatpush3.bf16.msra.mxu1 %v5276_v1  ;;  %4419 = vmatprep.subr.bf16.mxu0 %v5277_v2  ;;  %v1984_v15 = vpack.c.bf16 %v1962_v14, %v1961_v9  ;;  %v5096_v44 = vpop.permute.xlu1 %5095  ;;  %v5303_v2 = vld [vmem:[#allocation12 + $0x40] sm:$0xff]  }
 0x5d4   : > { %4399 = vmatprep.subr.bf16.mxu1 %v5278_v8  ;;  %v5098_v24 = vunpack.i.h.bf16 %v5096_v44  ;;  %v5097_v38 = vunpack.i.l.bf16 %v5096_v44 }
 0x5d5   : > { %2573 = vmatprep.mubr.bf16.mxu0 %v1984_v15 }
 0x5d6   : > { %4420 = vmatpush3.bf16.msra.mxu0 %v5279_v13  ;;  %v1974_v51 = vsel %vm776_vm12, %v5097_v38, %v5098_v24 }
 0x5d7   : > { %4400 = vmatpush3.bf16.msra.mxu1 %v5280_v16  ;;  %4421 = vmatprep.subr.bf16.mxu0 %v5281_v17 }
 0x5d8   : > { %4401 = vmatprep.subr.bf16.mxu1 %v5282_v18 }
 0x5da   : > { %4422 = vmatpush3.bf16.msra.mxu0 %v5283_v19 }
 0x5db   : > { %4402 = vmatpush3.bf16.msra.mxu1 %v5284_v21  ;;  %4423 = vmatprep.subr.bf16.mxu0 %v5285_v22 }
 0x5dc   : > { %4403 = vmatprep.subr.bf16.mxu1 %v5286_v23 }
 0x5de   : > { %4424 = vmatpush3.bf16.msra.mxu0 %v5287_v25 }
 0x5df   : > { %4404 = vmatpush3.bf16.msra.mxu1 %v5288_v26  ;;  %4425 = vmatprep.subr.bf16.mxu0 %v5289_v27 }
 0x5e0   : > { %4405 = vmatprep.subr.bf16.mxu1 %v5290_v28 }
 0x5e2   : > { %4426 = vmatpush3.bf16.msra.mxu0 %v5291_v33 }
 0x5e3   : > { %4406 = vmatpush3.bf16.msra.mxu1 %v5292_v34  ;;  %4427 = vmatprep.subr.bf16.mxu0 %v5293_v36 }
 0x5e4   : > { %4665 = vmatprep.subr.bf16.mxu1 %v6117_v35 }
 0x5e6   : > { %2533 = vmatmul.mubr.bf16.vlgmr.msra.gmra.mrb[16].mxu1 %v1981_v10  ;;  %4428 = vmatpush3.bf16.msra.mxu0 %v5294_v40 }
 0x5e7   : > { %4666 = vmatpush3.bf16.msra.mxu1 %v5295_v7  ;;  %4681 = vmatprep.mubr.msk.bf16.mxu1 %vm5682_vm13, %v6117_v35 }
 0x5e8   : > { %4667 = vmatprep.subr.bf16.mxu1 %v6117_v35  ;;  %4823 = vmatprep.subr.bf16.mxu0 %v5683_v52 }
 0x5e9   : > { %2574 = vmatmul.mubr.bf16.vlgmr.msra.gmra.mrb[20].mxu0 %v1983_v42  ;;  %v5091_v42 = vpop.permute.xlu0 %5090 }
 0x5ea   : > { %4825 = vmatpush3.bf16.msra.mxu0 %v6139_v53  ;;  %4717 = vmatprep.mubr.msk.f32.mxu0 %vm5682_vm13, %v6117_v35  ;;  %v5093_v46 = vunpack.i.h.bf16 %v5091_v42  ;;  %v5092_v20 = vunpack.i.l.bf16 %v5091_v42 }
 0x5eb   : > { %4668 = vmatpush3.bf16.msra.mxu1 %v5296_v11  ;;  %4826 = vmatprep.subr.bf16.mxu0 %v5683_v52 }
 0x5ec   : > { %4669 = vmatprep.subr.bf16.mxu1 %v6117_v35  ;;  %v1973_v50 = vsel %vm776_vm12, %v5092_v20, %v5093_v46 }
 0x5ed   : > { %v1985_v54 = vpack.c.bf16 %v1974_v51, %v1973_v50 }
 0x5ee   : > { %4828 = vmatpush3.bf16.msra.mxu0 %v6143_v55 }
 0x5ef   : > { %4670 = vmatpush3.bf16.msra.mxu1 %v5297_v41  ;;  %4829 = vmatprep.subr.bf16.mxu0 %v5683_v52 }
 0x5f0   : > { %4671 = vmatprep.subr.bf16.mxu1 %v6117_v35 }
 0x5f2   : > { %4831 = vmatpush3.bf16.msra.mxu0 %v6149_v58 }
 0x5f3   : > { %4672 = vmatpush3.bf16.msra.mxu1 %v5298_v43  ;;  %4832 = vmatprep.subr.bf16.mxu0 %v5683_v52 }
 0x5f4   : > { %4673 = vmatprep.subr.bf16.mxu1 %v6117_v35 }
 0x5f6   : > { %4834 = vmatpush3.bf16.msra.mxu0 %v6158_v61 }
 0x5f7   : > { %4674 = vmatpush3.bf16.msra.mxu1 %v5299_v47  ;;  %4835 = vmatprep.subr.bf16.mxu0 %v5683_v52 }
 0x5f8   : > { %4675 = vmatprep.subr.bf16.mxu1 %v6117_v35 }
 0x5fa   : > { %4837 = vmatpush3.bf16.msra.mxu0 %v6164_v0 }
 0x5fb   : > { %4676 = vmatpush3.bf16.msra.mxu1 %v5300_v49  ;;  %4838 = vmatprep.subr.bf16.mxu0 %v5683_v52 }
 0x5fc   : > { %4677 = vmatprep.subr.bf16.mxu1 %v6117_v35 }
 0x5fe   : > { %4840 = vmatpush3.bf16.msra.mxu0 %v6170_v3 }
 0x5ff   : > { %4678 = vmatpush3.bf16.msra.mxu1 %v5301_v45  ;;  %4841 = vmatprep.subr.bf16.mxu0 %v5683_v52 }
 0x600   : > { %4679 = vmatprep.subr.bf16.mxu1 %v6117_v35 }
 0x602   : > { %4843 = vmatpush3.bf16.msra.mxu0 %v6176_v6 }
 0x603   : > { %4680 = vmatpush3.bf16.msra.mxu1 %v5302_v48  ;;  %4844 = vmatprep.subr.bf16.mxu0 %v5683_v52 }
 0x604   : > { %4847 = vmatprep.subr.bf16.mxu1 %v5683_v52 }
 0x606   : > { %4682 = vmatmul.mubr.bf16.vlgmr.msra.gmra.mrb[20].mxu1 %v1985_v54  ;;  %4846 = vmatpush3.bf16.msra.mxu0 %v6182_v12 }
 0x607   : > { %4849 = vmatpush3.bf16.msra.mxu1 %v6139_v53  ;;  %4752 = vmatprep.mubr.msk.f32.mxu1 %vm5682_vm13, %v6117_v35  ;;  %v2829_v53 = vpop.permute.xlu1 %2828 }
 0x608   : > { %4850 = vmatprep.subr.bf16.mxu1 %v5683_v52  ;;  %2837 = vst.msk [vmem:[#allocation3 + $0x10] sm:$0xff] %vm587_vm7, %v2829_v53  ;;  %4478 = vmatprep.subr.bf16.mxu0 %v5303_v2 }
 0x609   : > { %2838 = vst.msk [vmem:[#allocation3 + $0x18] sm:$0xff] %vm589_vm8, %v2829_v53 }
 0x60b   : > { %4852 = vmatpush3.bf16.msra.mxu1 %v6143_v55  ;;  %v2827_v55 = vpop.permute.xlu0 %2826 }
 0x60c   : > { %4853 = vmatprep.subr.bf16.mxu1 %v5683_v52  ;;  %2835 = vst.msk [vmem:[#allocation3] sm:$0xfe] %vm583_vm3, %v2827_v55 }
 0x60d   : > { %2836 = vst.msk [vmem:[#allocation3 + $0x8] sm:$0xfe] %vm585_vm4, %v2827_v55 }
 0x60f   : > { %4855 = vmatpush3.bf16.msra.mxu1 %v6149_v58  ;;  %v6328_v58 = vld [vmem:[#allocation3 + $0x10] sm:$0xff] }
 0x610   : > { %4856 = vmatprep.subr.bf16.mxu1 %v5683_v52  ;;  %v3028_v59 = vrot.slane %v6328_v58, 1  ;;  %v3068_v22 = vrot.slane %v6328_v58, 2 }
 0x613   : > { %4858 = vmatpush3.bf16.msra.mxu1 %v6158_v61  ;;  %v2988_v61 = vld [vmem:[#allocation3 + $0x18] sm:$0xff]  ;;  %v2989_v56 = vld [vmem:[#allocation3] sm:$0xfe] }
 0x614   : > { %4859 = vmatprep.subr.bf16.mxu1 %v5683_v52  ;;  %v2991_v57 = vld [vmem:[#allocation3 + $0x8] sm:$0xfe]  ;;  %v3037_v62 = vrot.slane %v2988_v61, 1  ;;  %v3027_v63 = vrot.slane %v2989_v56, 1  ;;  %v2993_v19 = vld [vmem:[#allocation3] sm:$0xfc] }
 0x615   : > { %v3036_v1 = vrot.slane %v2991_v57, 1  ;;  %v2995_v21 = vld [vmem:[#allocation3 + $0x8] sm:$0xfc]  ;;  %v3077_v23 = vrot.slane %v2988_v61, 2  ;;  %v3067_v26 = vrot.slane %v2993_v19, 2 }
 0x616   : > { %v6342_v4 = vsel %vm783_vm9, %v3027_v63, %v3028_v59  ;;  %v3076_v27 = vrot.slane %v2995_v21, 2 }
 0x617   : > { %4861 = vmatpush3.bf16.msra.mxu1 %v6164_v0  ;;  %v6330_v0 = vld [vmem:[#allocation3] sm:$0xff]  ;;  %v3038_v5 = vsel %vm783_vm9, %v3036_v1, %v3037_v62  ;;  %v6359_v32 = vsel %vm824_vm10, %v3067_v26, %v3068_v22 }
 0x618   : > { %4862 = vmatprep.subr.bf16.mxu1 %v5683_v52  ;;  %v5119_v8 = vpack.i.bf16 %v3038_v5, %v6342_v4  ;;  %v3105_v25 = vpack.c.bf16 %v6328_v58, %v6330_v0  ;;  %v3078_v33 = vsel %vm824_vm10, %v3076_v27, %v3077_v23 }
 0x619   : > { %v5139_v34 = vpack.i.bf16 %v3078_v33, %v6359_v32 }
 0x61b   : > { %4864 = vmatpush3.bf16.msra.mxu1 %v6170_v3  ;;  %v5104_v3 = vpack.i.bf16 %v2988_v61, %v6328_v58  ;;  %v5330_v58 = vld [vmem:[#allocation12 + $0x128] sm:$0xff]  }
 0x61c   : > { %4865 = vmatprep.subr.bf16.mxu1 %v5683_v52 }
 0x61d   : > { %5105 = vrot.lane.b32.xlu0 %v5104_v3, %s5680_s28 }
 0x61f   : > { %4867 = vmatpush3.bf16.msra.mxu1 %v6176_v6 }
 0x620   : > { %4868 = vmatprep.subr.bf16.mxu1 %v5683_v52  ;;  %v2987_v52 = vld [vmem:[#allocation3 + $0x8] sm:$0xff] }
 0x621   : > { %v5099_v6 = vpack.i.bf16 %v2987_v52, %v6330_v0  ;;  %5115 = vrot.lane.b32.xlu0 %v5104_v3, %s5681_s18  ;;  %v5331_v0 = vld [vmem:[#allocation12 + $0x170] sm:$0xff]  }
 0x623   : > { %4870 = vmatpush3.bf16.msra.mxu1 %v6182_v12  ;;  %5100 = vrot.lane.b32.xlu1 %v5099_v6, %s5680_s28  ;;  %v2831_v12 = vpop.permute.xlu0 %2830 }
 0x624   : > { %2839 = vst.msk [vmem:[#allocation3 + $0x20] sm:$0x1] %vm591_vm5, %v2831_v12 }
 0x625   : > { %2840 = vst.msk [vmem:[#allocation3 + $0x28] sm:$0x1] %vm593_vm6, %v2831_v12 }
 0x627   : > { %5110 = vrot.lane.b32.xlu1 %v5099_v6, %s5681_s18 }
 0x62b   : > { %5120 = vrot.lane.b32.xlu1 %v5119_v8, %s5681_s18  ;;  %v2990_v9 = vld [vmem:[#allocation3 + $0x20] sm:$0x1] }
 0x62c   : > { %v2992_v13 = vld [vmem:[#allocation3 + $0x28] sm:$0x1]  ;;  %v3030_v14 = vrot.slane %v2990_v9, 1  ;;  %v2994_v28 = vld [vmem:[#allocation3 + $0x20] sm:$0x3] }
 0x62d   : > { %v3039_v15 = vrot.slane %v2992_v13, 1  ;;  %v2996_v29 = vld [vmem:[#allocation3 + $0x28] sm:$0x3]  ;;  %v3070_v30 = vrot.slane %v2994_v28, 2 }
 0x62e   : > { %v6349_v16 = vsel %vm783_vm9, %v3028_v59, %v3030_v14  ;;  %v3079_v31 = vrot.slane %v2996_v29, 2 }
 0x62f   : > { %5130 = vrot.lane.b32.xlu1 %v5119_v8, %s5680_s28  ;;  %v3040_v17 = vsel %vm783_vm9, %v3037_v62, %v3039_v15  ;;  %v6364_v36 = vsel %vm824_vm10, %v3068_v22, %v3070_v30 }
 0x630   : > { %v5124_v18 = vpack.i.bf16 %v3040_v17, %v6349_v16  ;;  %v3080_v37 = vsel %vm824_vm10, %v3077_v23, %v3079_v31 }
 0x631   : > { %v5144_v39 = vpack.i.bf16 %v3080_v37, %v6364_v36 }
 0x632   : > { %5125 = vrot.lane.b32.xlu0 %v5124_v18, %s5681_s18 }
 0x633   : > { %5140 = vrot.lane.b32.xlu1 %v5139_v34, %s5680_s28 }
 0x636   : > { %5135 = vrot.lane.b32.xlu0 %v5124_v18, %s5680_s28 }
 0x637   : > { %5150 = vrot.lane.b32.xlu1 %v5139_v34, %s5681_s18 }
 0x63a   : > { %5145 = vrot.lane.b32.xlu0 %v5144_v39, %s5680_s28 }
 0x63e   : > { %5155 = vrot.lane.b32.xlu0 %v5144_v39, %s5681_s18 }
 0x68f   : > { %v5106_v8 = vpop.permute.xlu0 %5105 }
 0x690   : > { %v5108_v18 = vunpack.i.h.bf16 %v5106_v8  ;;  %v5107_v31 = vunpack.i.l.bf16 %v5106_v8  ;;  %v5322_v8 = vld [vmem:[#allocation12 + $0x108] sm:$0xff]  }
 0x693   : > { %v5116_v21 = vpop.permute.xlu0 %5115 }
 0x694   : > { %v5118_v26 = vunpack.i.h.bf16 %v5116_v21  ;;  %v5117_v27 = vunpack.i.l.bf16 %v5116_v21  ;;  %v5329_v21 = vld [vmem:[#allocation12 + $0x168] sm:$0xff]  }
 0x695   : > { %v5101_v14 = vpop.permute.xlu1 %5100 }
 0x696   : > { %v5103_v29 = vunpack.i.h.bf16 %v5101_v14  ;;  %v5102_v30 = vunpack.i.l.bf16 %v5101_v14  ;;  %v6382_v34 = vsel %vm776_vm12, %v5117_v27, %v5118_v26  ;;  %v5324_v14 = vld [vmem:[#allocation12 + $0x110] sm:$0xff]  }
 0x699   : > { %v4363_v40 = vpop.f32.mrb[12].mxu1  ;;  %v5111_v19 = vpop.permute.xlu1 %5110 }
 0x69a   : > { %v4364_v7 = vpop.f32.mrb[13].mxu1  ;;  %v5113_v22 = vunpack.i.h.bf16 %v5111_v19  ;;  %v5112_v23 = vunpack.i.l.bf16 %v5111_v19  ;;  %v5328_v19 = vld [vmem:[#allocation12 + $0x120] sm:$0xff]  }
 0x69b   : > { %v4365_v10 = vadd.f32 %v4364_v7, %v4363_v40  ;;  %v4366_v11 = vpop.f32.mrb[14].mxu1  ;;  %v3009_v7 = vsel %vm763_vm11, %v5102_v30, %v5103_v29  ;;  %v5333_v30 = vld [vmem:[#allocation12 + $0x178] sm:$0xff]  }
 0x69c   : > { %v4367_v41 = vpop.f32.mrb[15].mxu1  ;;  %v4385_v43 = vpop.f32.mrb[16].mxu0  ;;  %v6379_v33 = vsel %vm776_vm12, %v5112_v23, %v5113_v22  ;;  %v5332_v23 = vld [vmem:[#allocation12 + $0x130] sm:$0xff]  }
 0x69d   : > { %v4368_v47 = vadd.f32 %v4367_v41, %v4366_v11  ;;  %v4386_v49 = vpop.f32.mrb[17].mxu0  ;;  %v3107_v39 = vpack.c.bf16 %v6382_v34, %v6379_v33  ;;  %v5304_v41 = vld [vmem:[#allocation12] sm:$0xff]   ;;  %v5370_v33 = vld [vmem:[#allocation12 + $0x1a8] sm:$0xff]   ;;  %v5371_v34 = vld [vmem:[#allocation12 + $0x1f0] sm:$0xff]  }
 0x69e   : > { %v4387_v42 = vadd.f32 %v4386_v49, %v4385_v43  ;;  %v4388_v44 = vpop.f32.mrb[18].mxu0  ;;  %v5305_v49 = vld [vmem:[#allocation12 + $0x48] sm:$0xff]  }
 0x69f   : > { %v4389_v45 = vpop.f32.mrb[19].mxu0 }
 0x6a0   : > { %v2494_v46 = vadd.f32 %v4387_v42, %v4365_v10  ;;  %v4390_v20 = vadd.f32 %v4389_v45, %v4388_v44  ;;  %v3010_v10 = vsel %vm763_vm11, %v5107_v31, %v5108_v18  ;;  %v5306_v42 = vld [vmem:[#allocation12 + $0x8] sm:$0xff]   ;;  %v5307_v44 = vld [vmem:[#allocation12 + $0x50] sm:$0xff]   ;;  %v5327_v18 = vld [vmem:[#allocation12 + $0x160] sm:$0xff]  }
 0x6a1   : > { %v3106_v43 = vpack.c.bf16 %v3010_v10, %v3009_v7  ;;  %v5308_v45 = vld [vmem:[#allocation12 + $0x10] sm:$0xff]   ;;  %v5335_v10 = vld [vmem:[#allocation12 + $0x200] sm:$0xff]  }
 0x6a2   : > { %v2497_v24 = vadd.f32 %v4390_v20, %v4368_v47  ;;  %v5310_v20 = vld [vmem:[#allocation12 + $0x18] sm:$0xff]  }
 0x6b9   : > { %v4407_v38 = vpop.f32.mrb[16].mxu1 }
 0x6ba   : > { %v4408_v48 = vpop.f32.mrb[17].mxu1 }
 0x6bb   : > { %v4409_v50 = vadd.f32 %v4408_v48, %v4407_v38  ;;  %v4410_v51 = vpop.f32.mrb[18].mxu1  ;;  %v5312_v38 = vld [vmem:[#allocation12 + $0x20] sm:$0xff]   ;;  %v5313_v48 = vld [vmem:[#allocation12 + $0x68] sm:$0xff]  }
 0x6bc   : > { %v4411_v54 = vpop.f32.mrb[19].mxu1  ;;  %v4429_v53 = vpop.f32.mrb[20].mxu0 }
 0x6bd   : > { %v2535_v55 = vadd.f32 %v4409_v50, %v2494_v46  ;;  %v4412_v61 = vadd.f32 %v4411_v54, %v4410_v51  ;;  %v4430_v3 = vpop.f32.mrb[21].mxu0  ;;  %v5309_v46 = vld [vmem:[#allocation12 + $0x58] sm:$0xff]   ;;  %v5314_v50 = vld [vmem:[#allocation12 + $0x28] sm:$0xff]   ;;  %v5315_v51 = vld [vmem:[#allocation12 + $0x70] sm:$0xff]  }
 0x6be   : > { %v4431_v52 = vadd.f32 %v4430_v3, %v4429_v53  ;;  %v4432_v6 = vpop.f32.mrb[22].mxu0  ;;  %v5316_v54 = vld [vmem:[#allocation12 + $0x30] sm:$0xff]   ;;  %v5121_v53 = vpop.permute.xlu1 %5120 }
 0x6bf   : > { %v2538_v12 = vadd.f32 %v4412_v61, %v2497_v24  ;;  %v4433_v56 = vpop.f32.mrb[23].mxu0  ;;  %v5311_v24 = vld [vmem:[#allocation12 + $0x60] sm:$0xff]   ;;  %v5317_v61 = vld [vmem:[#allocation12 + $0x78] sm:$0xff]   ;;  %v5123_v3 = vunpack.i.h.bf16 %v5121_v53 }
 0x6c0   : > { %v4434_v57 = vadd.f32 %v4433_v56, %v4432_v6  ;;  %v2576_v59 = vadd.f32 %v4431_v52, %v2535_v55  ;;  %v5126_v55 = vpop.permute.xlu0 %5125  ;;  %v5122_v52 = vunpack.i.l.bf16 %v5121_v53  ;;  %v5318_v56 = vld [vmem:[#allocation12 + $0x38] sm:$0xff]  }
 0x6c1   : > { %v5128_v6 = vunpack.i.h.bf16 %v5126_v55 }
 0x6c2   : > { %v2579_v62 = vadd.f32 %v4434_v57, %v2538_v12  ;;  %v5127_v12 = vunpack.i.l.bf16 %v5126_v55  ;;  %v5319_v57 = vld [vmem:[#allocation12 + $0x140] sm:$0xff]   ;;  %v5344_v55 = vld [vmem:[#allocation12 + $0x238] sm:$0xff]  }
 0x6c4   : > { %v5136_v22 = vpop.permute.xlu0 %5135 }
 0x6c5   : > { %v5137_v29 = vunpack.i.l.bf16 %v5136_v22 }
 0x6d9   : > { %v2616_v63 = vpop.f32.mrb[20].mxu1 }
 0x6da   : > { %v6372_v1 = vadd.f32 %v2616_v63, %v2576_v59  ;;  %v4683_v2 = vpop.f32.mrb[21].mxu1  ;;  %v3061_v59 = vsel %vm776_vm12, %v5122_v52, %v5123_v3  ;;  %v5320_v63 = vld [vmem:[#allocation12 + $0x100] sm:$0xff]  }
 0x6db   : > { %v2619_v5 = vpop.f32.mrb[22].mxu1 }
 0x6dc   : > { %v6374_v9 = vadd.f32 %v2619_v5, %v2579_v62  ;;  %v4684_v13 = vpop.f32.mrb[23].mxu1  ;;  %v3062_v62 = vsel %vm776_vm12, %v5127_v12, %v5128_v6  ;;  %v5321_v5 = vld [vmem:[#allocation12 + $0x148] sm:$0xff]  }
 0x6dd   : > { %v3110_v2 = vpack.c.bf16 %v3062_v62, %v3061_v59  ;;  %v5323_v13 = vld [vmem:[#allocation12 + $0x150] sm:$0xff]  }
 0x6de   : > { %v2625_v15 = vadd.f32 %v6374_v9, %v6372_v1 }
 0x6e0   : > { %v2626_v17 = vrot.slane %v2625_v15, 4 }
 0x6e2   : > { %v2627_v28 = vadd.f32 %v2626_v17, %v2625_v15  ;;  %v5325_v15 = vld [vmem:[#allocation12 + $0x158] sm:$0xff]  }
 0x6e3   : > { %v5326_v17 = vld [vmem:[#allocation12 + $0x118] sm:$0xff]  }
 0x6e4   : > { %v2628_v37 = vrot.slane %v2627_v28, 2 }
 0x6e6   : > { %v2629_v40 = vadd.f32 %v2628_v37, %v2627_v28  ;;  %v5138_v28 = vunpack.i.h.bf16 %v5136_v22  ;;  %v5347_v22 = vld [vmem:[#allocation12 + $0xd0] sm:$0xff]  }
 0x6e8   : > { %v2630_v11 = vrot.slane %v2629_v40, 1  ;;  %v3050_v37 = vsel %vm763_vm11, %v5137_v29, %v5138_v28  ;;  %v5351_v28 = vld [vmem:[#allocation12 + $0xe0] sm:$0xff]  }
 0x6ea   : > { %v2631_v47 = vadd.f32 %v2630_v11, %v2629_v40  ;;  %v5334_v40 = vld [vmem:[#allocation12 + $0x138] sm:$0xff]   ;;  %v5336_v11 = vld [vmem:[#allocation12 + $0x208] sm:$0xff]  }
 0x6ec   : > { %4718 = vmatmul.mubr.f32.vlgmr.msra.gmra.mrb[14].mxu0 %v2631_v47  ;;  %v5339_v47 = vld [vmem:[#allocation12 + $0x220] sm:$0xff]  }
 0x6ed   : > { %4479 = vmatpush3.bf16.msra.mxu0 %v5304_v41  ;;  %3585 = vmatprep.mubr.bf16.mxu0 %v3106_v43  ;;  %v5337_v41 = vld [vmem:[#allocation12 + $0x210] sm:$0xff]   ;;  %v5338_v43 = vld [vmem:[#allocation12 + $0x218] sm:$0xff]  }
 0x6ee   : > { %4480 = vmatprep.subr.bf16.mxu0 %v5305_v49  ;;  %v5340_v49 = vld [vmem:[#allocation12 + $0x228] sm:$0xff]  }
 0x6f1   : > { %4481 = vmatpush3.bf16.msra.mxu0 %v5306_v42 }
 0x6f2   : > { %4482 = vmatprep.subr.bf16.mxu0 %v5307_v44  ;;  %v5146_v44 = vpop.permute.xlu0 %5145 }
 0x6f3   : > { %v5148_v52 = vunpack.i.h.bf16 %v5146_v44  ;;  %v5147_v6 = vunpack.i.l.bf16 %v5146_v44  ;;  %v5361_v44 = vld [vmem:[#allocation12 + $0x1c8] sm:$0xff]  }
 0x6f5   : > { %4483 = vmatpush3.bf16.msra.mxu0 %v5308_v45  ;;  %v5342_v45 = vld [vmem:[#allocation12 + $0xc0] sm:$0xff]  }
 0x6f6   : > { %4484 = vmatprep.subr.bf16.mxu0 %v5309_v46  ;;  %4500 = vmatprep.subr.bf16.mxu1 %v5342_v45  ;;  %v5341_v46 = vld [vmem:[#allocation12 + $0x230] sm:$0xff]   ;;  %v5362_v45 = vld [vmem:[#allocation12 + $0x188] sm:$0xff]  }
 0x6f9   : > { %4485 = vmatpush3.bf16.msra.mxu0 %v5310_v20 }
 0x6fa   : > { %4486 = vmatprep.subr.bf16.mxu0 %v5311_v24  ;;  %v5156_v24 = vpop.permute.xlu0 %5155 }
 0x6fd   : > { %4487 = vmatpush3.bf16.msra.mxu0 %v5312_v38 }
 0x6fe   : > { %4488 = vmatprep.subr.bf16.mxu0 %v5313_v48 }
 0x701   : > { %4489 = vmatpush3.bf16.msra.mxu0 %v5314_v50  ;;  %v5158_v50 = vunpack.i.h.bf16 %v5156_v24 }
 0x702   : > { %4490 = vmatprep.subr.bf16.mxu0 %v5315_v51  ;;  %v5157_v51 = vunpack.i.l.bf16 %v5156_v24  ;;  %v5365_v24 = vld [vmem:[#allocation12 + $0x1d8] sm:$0xff]  }
 0x704   : > { %v3102_v53 = vsel %vm776_vm12, %v5157_v51, %v5158_v50  ;;  %v5368_v50 = vld [vmem:[#allocation12 + $0x1a0] sm:$0xff]   ;;  %v5369_v51 = vld [vmem:[#allocation12 + $0x1e8] sm:$0xff]  }
 0x705   : > { %4491 = vmatpush3.bf16.msra.mxu0 %v5316_v54 }
 0x706   : > { %4492 = vmatprep.subr.bf16.mxu0 %v5317_v61 }
 0x709   : > { %4493 = vmatpush3.bf16.msra.mxu0 %v5318_v56 }
 0x70a   : > { %4522 = vmatprep.subr.bf16.mxu0 %v5319_v57  ;;  %v3090_v57 = vsel %vm763_vm11, %v5147_v6, %v5148_v52 }
 0x70c   : > { %3586 = vmatmul.mubr.bf16.vlgmr.msra.gmra.mrb[24].mxu0 %v3105_v25  ;;  %v5131_v25 = vpop.permute.xlu1 %5130 }
 0x70d   : > { %4523 = vmatpush3.bf16.msra.mxu0 %v5320_v63  ;;  %3667 = vmatprep.mubr.bf16.mxu0 %v3110_v2  ;;  %v5133_v26 = vunpack.i.h.bf16 %v5131_v25  ;;  %v5132_v27 = vunpack.i.l.bf16 %v5131_v25  ;;  %v5345_v25 = vld [vmem:[#allocation12 + $0xc8] sm:$0xff]  }
 0x70e   : > { %4524 = vmatprep.subr.bf16.mxu0 %v5321_v5 }
 0x70f   : > { %v3049_v31 = vsel %vm763_vm11, %v5132_v27, %v5133_v26  ;;  %v5349_v26 = vld [vmem:[#allocation12 + $0xd8] sm:$0xff]  }
 0x710   : > { %v3109_v7 = vpack.c.bf16 %v3050_v37, %v3049_v31  ;;  %v5141_v42 = vpop.permute.xlu1 %5140  ;;  %v5350_v27 = vld [vmem:[#allocation12 + $0x98] sm:$0xff]   ;;  %v5352_v31 = vld [vmem:[#allocation12 + $0xa0] sm:$0xff]  }
 0x711   : > { %4525 = vmatpush3.bf16.msra.mxu0 %v5322_v8  ;;  %v5143_v61 = vunpack.i.h.bf16 %v5141_v42  ;;  %v5142_v3 = vunpack.i.l.bf16 %v5141_v42  ;;  %v5360_v42 = vld [vmem:[#allocation12 + $0x180] sm:$0xff]  }
 0x712   : > { %4526 = vmatprep.subr.bf16.mxu0 %v5323_v13 }
 0x713   : > { %v3089_v56 = vsel %vm763_vm11, %v5142_v3, %v5143_v61 }
 0x714   : > { %v5151_v20 = vpop.permute.xlu1 %5150  ;;  %v3112_v59 = vpack.c.bf16 %v3090_v57, %v3089_v56 }
 0x715   : > { %4527 = vmatpush3.bf16.msra.mxu0 %v5324_v14  ;;  %v5153_v38 = vunpack.i.h.bf16 %v5151_v20  ;;  %v5152_v48 = vunpack.i.l.bf16 %v5151_v20  ;;  %v5364_v20 = vld [vmem:[#allocation12 + $0x190] sm:$0xff]  }
 0x716   : > { %4528 = vmatprep.subr.bf16.mxu0 %v5325_v15 }
 0x717   : > { %v3101_v54 = vsel %vm776_vm12, %v5152_v48, %v5153_v38  ;;  %v5366_v38 = vld [vmem:[#allocation12 + $0x198] sm:$0xff]   ;;  %v5367_v48 = vld [vmem:[#allocation12 + $0x1e0] sm:$0xff]  }
 0x718   : > { %v3113_v12 = vpack.c.bf16 %v3102_v53, %v3101_v54  ;;  %v5373_v54 = vld [vmem:[#allocation12 + $0x1f8] sm:$0xff]  }
 0x719   : > { %4529 = vmatpush3.bf16.msra.mxu0 %v5326_v17  ;;  %v5374_v53 = vld [vmem:[#allocation12 + $0x1b8] sm:$0xff]  }
 0x71a   : > { %4530 = vmatprep.subr.bf16.mxu0 %v5327_v18 }
 0x71d   : > { %4531 = vmatpush3.bf16.msra.mxu0 %v5328_v19 }
 0x71e   : > { %4532 = vmatprep.subr.bf16.mxu0 %v5329_v21 }
 0x721   : > { %4533 = vmatpush3.bf16.msra.mxu0 %v5330_v58  ;;  %v5343_v58 = vld [vmem:[#allocation12 + $0x80] sm:$0xff]  }
 0x722   : > { %4534 = vmatprep.subr.bf16.mxu0 %v5331_v0 }
 0x725   : > { %4535 = vmatpush3.bf16.msra.mxu0 %v5332_v23  ;;  %v5348_v23 = vld [vmem:[#allocation12 + $0x90] sm:$0xff]  }
 0x726   : > { %4536 = vmatprep.subr.bf16.mxu0 %v5333_v30 }
 0x729   : > { %4537 = vmatpush3.bf16.msra.mxu0 %v5334_v40 }
 0x72a   : > { %4755 = vmatprep.subr.bf16.mxu0 %v6117_v35 }
 0x72c   : > { %3668 = vmatmul.mubr.bf16.vlgmr.msra.gmra.mrb[28].mxu0 %v3109_v7 }
 0x72d   : > { %4756 = vmatpush3.bf16.msra.mxu0 %v5335_v10  ;;  %4771 = vmatprep.mubr.msk.bf16.mxu0 %vm5682_vm13, %v6117_v35  ;;  %v5354_v10 = vld [vmem:[#allocation12 + $0xa8] sm:$0xff]  }
 0x72e   : > { %4757 = vmatprep.subr.bf16.mxu0 %v6117_v35 }
 0x731   : > { %4758 = vmatpush3.bf16.msra.mxu0 %v5336_v11  ;;  %v5355_v11 = vld [vmem:[#allocation12 + $0xf0] sm:$0xff]  }
 0x732   : > { %4759 = vmatprep.subr.bf16.mxu0 %v6117_v35 }
 0x735   : > { %4760 = vmatpush3.bf16.msra.mxu0 %v5337_v41  ;;  %v5356_v41 = vld [vmem:[#allocation12 + $0xb0] sm:$0xff]  }
 0x736   : > { %4761 = vmatprep.subr.bf16.mxu0 %v6117_v35 }
 0x739   : > { %4762 = vmatpush3.bf16.msra.mxu0 %v5338_v43  ;;  %v5357_v43 = vld [vmem:[#allocation12 + $0xf8] sm:$0xff]  }
 0x73a   : > { %4763 = vmatprep.subr.bf16.mxu0 %v6117_v35 }
 0x73d   : > { %4764 = vmatpush3.bf16.msra.mxu0 %v5339_v47  ;;  %v5358_v47 = vld [vmem:[#allocation12 + $0xb8] sm:$0xff]  }
 0x73e   : > { %4765 = vmatprep.subr.bf16.mxu0 %v6117_v35 }
 0x741   : > { %4766 = vmatpush3.bf16.msra.mxu0 %v5340_v49  ;;  %v5359_v49 = vld [vmem:[#allocation12 + $0x1c0] sm:$0xff]  }
 0x742   : > { %4767 = vmatprep.subr.bf16.mxu0 %v6117_v35 }
 0x745   : > { %4768 = vmatpush3.bf16.msra.mxu0 %v5341_v46  ;;  %v5363_v46 = vld [vmem:[#allocation12 + $0x1d0] sm:$0xff]  }
 0x746   : > { %4769 = vmatprep.subr.bf16.mxu0 %v6117_v35 }
 0x749   : > { %4770 = vmatpush3.bf16.msra.mxu0 %v5344_v55  ;;  %v3111_v55 = vpack.c.bf16 %v6364_v36, %v6359_v32 }
 0x74c   : > { %4772 = vmatmul.mubr.bf16.vlgmr.msra.gmra.mrb[32].mxu0 %v3113_v12 }
 0x7bf   : > { %v2698_v62 = vpop.f32.mrb[14].mxu0 }
 0x7c0   : > { %v2705_v63 = vrot.slane %v2698_v62, %v6186_v60  ;;  %v4719_v2 = vpop.f32.mrb[15].mxu0 }
 0x7c2   : > { %v6411_v5 = vsub.f32 %v6372_v1, %v2705_v63  ;;  %v6414_v35 = vsub.f32 %v6374_v9, %v2705_v63  ;;  %v3108_v1 = vpack.c.bf16 %v6349_v16, %v6342_v4  ;;  %v5346_v9 = vld [vmem:[#allocation12 + $0x88] sm:$0xff]  }
 0x7c3   : > { %v5353_v16 = vld [vmem:[#allocation12 + $0xe8] sm:$0xff]  }
 0x7c4   : > { %v2708_v8 = vmul.f32 %v6411_v5, %v6411_v5  ;;  %v2709_v13 = vmul.f32 %v6414_v35, %v6414_v35 }
 0x7c6   : > { %v2710_v14 = vadd.f32 %v2709_v13, %v2708_v8  ;;  %v2623_v8 = vld [vmem:[%s6560_s8] sm:$0x1] }
 0x7c8   : > { %v2711_v15 = vrot.slane %v2710_v14, 4 }
 0x7ca   : > { %v2712_v17 = vadd.f32 %v2711_v15, %v2710_v14 }
 0x7cc   : > { %v2713_v18 = vrot.slane %v2712_v17, 2 }
 0x7ce   : > { %v2714_v19 = vadd.f32 %v2713_v18, %v2712_v17  ;;  %v4130_v17 = vld [vmem:[%s6606_s16] ss:$0 sm:$0xff] }
 0x7d0   : > { %v2715_v21 = vrot.slane %v2714_v19, 1 }
 0x7d2   : > { %v2716_v0 = vadd.f32 %v2715_v21, %v2714_v19  ;;  %v2805_v21 = vld [vmem:[%s6025_s30] sm:$0xff] }
 0x7d4   : > { %4753 = vmatmul.mubr.f32.vlgmr.msra.gmra.mrb[10].mxu1 %v2716_v0 }
 0x7d5   : > { %4501 = vmatpush3.bf16.msra.mxu1 %v5343_v58  ;;  %3626 = vmatprep.mubr.bf16.mxu1 %v3108_v1  ;;  %v2806_v58 = vld [vmem:[%s6025_s30 + $0x8] sm:$0xff]  ;;  %s3763_s30 = scalar_lea.sflag [#allocation6], %s6018_s10 }
 0x7d6   : > { %4502 = vmatprep.subr.bf16.mxu1 %v5345_v25 }
 0x7d9   : > { %4503 = vmatpush3.bf16.msra.mxu1 %v5346_v9 }
 0x7da   : > { %4504 = vmatprep.subr.bf16.mxu1 %v5347_v22 }
 0x7dd   : > { %4505 = vmatpush3.bf16.msra.mxu1 %v5348_v23 }
 0x7de   : > { %4506 = vmatprep.subr.bf16.mxu1 %v5349_v26 }
 0x7df   : > { %v4494_v29 = vpop.f32.mrb[24].mxu0 }
 0x7e0   : > { %v4495_v30 = vpop.f32.mrb[25].mxu0 }
 0x7e1   : > { %4507 = vmatpush3.bf16.msra.mxu1 %v5350_v27  ;;  %v6422_v37 = vadd.f32 %v4495_v30, %v4494_v29  ;;  %v4497_v4 = vpop.f32.mrb[26].mxu0 }
 0x7e2   : > { %4508 = vmatprep.subr.bf16.mxu1 %v5351_v28  ;;  %v4498_v40 = vpop.f32.mrb[27].mxu0 }
 0x7e3   : > { %v6424_v7 = vadd.f32 %v4498_v40, %v4497_v4 }
 0x7e5   : > { %4509 = vmatpush3.bf16.msra.mxu1 %v5352_v31 }
 0x7e6   : > { %4510 = vmatprep.subr.bf16.mxu1 %v5353_v16 }
 0x7e9   : > { %4511 = vmatpush3.bf16.msra.mxu1 %v5354_v10 }
 0x7ea   : > { %4512 = vmatprep.subr.bf16.mxu1 %v5355_v11 }
 0x7ed   : > { %4513 = vmatpush3.bf16.msra.mxu1 %v5356_v41 }
 0x7ee   : > { %4514 = vmatprep.subr.bf16.mxu1 %v5357_v43 }
 0x7f1   : > { %4515 = vmatpush3.bf16.msra.mxu1 %v5358_v47 }
 0x7f2   : > { %4544 = vmatprep.subr.bf16.mxu1 %v5359_v49 }
 0x7f4   : > { %3627 = vmatmul.mubr.bf16.vlgmr.msra.gmra.mrb[24].mxu1 %v3107_v39  ;;  %v5372_v39 = vld [vmem:[#allocation12 + $0x1b0] sm:$0xff]  }
 0x7f5   : > { %4545 = vmatpush3.bf16.msra.mxu1 %v5360_v42  ;;  %3708 = vmatprep.mubr.bf16.mxu1 %v3112_v59 }
 0x7f6   : > { %4546 = vmatprep.subr.bf16.mxu1 %v5361_v44 }
 0x7f9   : > { %4547 = vmatpush3.bf16.msra.mxu1 %v5362_v45 }
 0x7fa   : > { %4548 = vmatprep.subr.bf16.mxu1 %v5363_v46 }
 0x7fd   : > { %4549 = vmatpush3.bf16.msra.mxu1 %v5364_v20 }
 0x7fe   : > { %4550 = vmatprep.subr.bf16.mxu1 %v5365_v24 }
 0x7ff   : > { %v4538_v61 = vpop.f32.mrb[28].mxu0 }
 0x800   : > { %v4539_v3 = vpop.f32.mrb[29].mxu0 }
 0x801   : > { %4551 = vmatpush3.bf16.msra.mxu1 %v5366_v38  ;;  %v4541_v52 = vpop.f32.mrb[30].mxu0  ;;  %v6435_v62 = vadd.f32 %v4539_v3, %v4538_v61 }
 0x802   : > { %4552 = vmatprep.subr.bf16.mxu1 %v5367_v48  ;;  %v4542_v6 = vpop.f32.mrb[31].mxu0 }
 0x803   : > { %v6437_v63 = vadd.f32 %v4542_v6, %v4541_v52 }
 0x805   : > { %4553 = vmatpush3.bf16.msra.mxu1 %v5368_v50 }
 0x806   : > { %4554 = vmatprep.subr.bf16.mxu1 %v5369_v51 }
 0x809   : > { %4555 = vmatpush3.bf16.msra.mxu1 %v5370_v33 }
 0x80a   : > { %4556 = vmatprep.subr.bf16.mxu1 %v5371_v34 }
 0x80d   : > { %4557 = vmatpush3.bf16.msra.mxu1 %v5372_v39 }
 0x80e   : > { %4558 = vmatprep.subr.bf16.mxu1 %v5373_v54 }
 0x811   : > { %4559 = vmatpush3.bf16.msra.mxu1 %v5374_v53 }
 0x814   : > { %3709 = vmatmul.mubr.bf16.vlgmr.msra.gmra.mrb[28].mxu1 %v3111_v55 }
 0x81f   : > { %v6431_v12 = vpop.f32.mrb[32].mxu0 }
 0x820   : > { %v4773_v56 = vpop.f32.mrb[33].mxu0 }
 0x821   : > { %v6433_v57 = vpop.f32.mrb[34].mxu0 }
 0x822   : > { %v4774_v59 = vpop.f32.mrb[35].mxu0 }
 0x8a7   : > { %v2783_v2 = vpop.f32.mrb[10].mxu1 }
 0x8a8   : > { %v2784_v32 = vadd.f32 1e-05, %v2783_v2  ;;  %v4754_v36 = vpop.f32.mrb[11].mxu1 }
 0x8aa   : > { %5377 = vrsqrt.f32 %v2784_v32 }
 0x8b4   : > { %v5378_v13 = vpop.eup %5377 }
 0x8b5   : > { %v2788_v14 = vmul.f32 %v5378_v13, %v2623_v8 }
 0x8b7   : > { %v2793_v15 = vrot.slane %v2788_v14, %v6186_v60 }
 0x8b9   : > { %v2795_v18 = vmul.f32 %v2793_v15, %v6411_v5  ;;  %v2796_v19 = vmul.f32 %v2793_v15, %v6414_v35 }
 0x8bb   : > { %v2803_v0 = vadd.f32 %v4130_v17, %v2795_v18  ;;  %v2804_v25 = vadd.f32 %v4130_v17, %v2796_v19 }
 0x8bd   : > { %v2807_v1 = vadd.f32 %v2805_v21, %v2803_v0  ;;  %v2808_v9 = vadd.f32 %v2806_v58, %v2804_v25 }
 0x8bf   : > { %v2809_v60 = vmax.f32 %v2807_v1, 0.0  ;;  %v2810_v5 = vmax.f32 %v2808_v9, 0.0 }
 0x8c1   : > { %2811 = vst [vmem:[%s533_s19] sm:$0xff] %v2809_v60  ;;  %2812 = vst [vmem:[%s533_s19 + $0x8] sm:$0xff] %v2810_v5 }
 0x8c2   : > { %5565 = shalt.err (!%p5562_p8)
}
 0x8c3   : > { %s5566_s20 = scalar_lea.hbm %s6457_s2, 256  ;;  %s5570_s19 = scalar_lea.hbm %s6607_s12, 512 }
 0x8c4   : > { %p5567_p11 = scmp.ne.s32.totalorder %s6457_s2, %s5566_s20  ;;  %p5571_p1 = scmp.lt.u32.totalorder %s6457_s2, %s6607_s12 }
 0x8c5   : > { %p5572_p2 = scmp.lt.u32.totalorder %s5570_s19, %s5566_s20  ;;  %p5574_p0 = scmp.lt.u32.totalorder %s5566_s20, %s6457_s2 }
 0x8c6   : > { %p5568_p7 = pnand %p5567_p11, %p5926_p3 }
 0x8c7   : > { %p5573_p13 = por %p5572_p2, %p5571_p1 }
 0x8c8   : > { %p5569_p12 = pneg %p5568_p7 }
 0x8c9   : > { %p5575_p4 = por %p5574_p0, %p5573_p13 }
 0x8cb   : > { %p5576_p6 = pnand %p5575_p4, %p5569_p12 }
 0x8cd   : > { %5579 = shalt.err (!%p5576_p6)
}
 0x8ce   : > { %s5685_s3 = smov 128   ;;  %s6608_s13 = sld [smem:[#allocation31_spill]]  ;;  %v4516_v22 = vpop.f32.mrb[24].mxu1 }
 0x8cf   : > { %4891 = dma.vmem_to_hbm [thread:$0]  (%p5926_p3), %s6459_s17, 256, %s6457_s2, %s3763_s30, %s5685_s3, %s5685_s3, %s5679_s27   ;;  %v4517_v23 = vpop.f32.mrb[25].mxu1 }
 0x8d0   : > { %v4518_v27 = vadd.f32 %v4517_v23, %v4516_v22  ;;  %v4519_v28 = vpop.f32.mrb[26].mxu1  ;;  %s540_s17 = scalar_lea.vmem [#allocation16], %s6021_s11  ;;  %s6609_s0 = sld [smem:[#allocation33_spill]] }
 0x8d1   : > { %v4520_v29 = vpop.f32.mrb[27].mxu1  ;;  %s3797_s2 = sshll.u32 %s540_s17, 4  ;;  %s3768_s11 = scalar_lea.sflag [#allocation17], %s6018_s10  ;;  %s6498_s2 = int_to_ptr.vmem [resolvable:$true] %s3797_s2 }
 0x8d2   : > { %v4521_v4 = vadd.f32 %v4520_v29, %v4519_v28  ;;  %s5580_s19 = scalar_lea.vmem %s6498_s2, 256  ;;  %s5686_s28 = smov [#allocation16]  }
 0x8d3   : > { %p5581_p10 = scmp.ne.s32.totalorder %s6498_s2, %s5580_s19  ;;  %s5584_s18 = sshll.u32 %s5686_s28, 4  ;;  %s5585_s18 = int_to_ptr.vmem [resolvable:$false] %s5584_s18 }
 0x8d4   : > { %v4131_v35 = vld [vmem:[%s6608_s13] ss:$0 sm:$0xff]  ;;  %s5586_s15 = scalar_lea.vmem %s5585_s18, 512  ;;  %p5587_p8 = scmp.lt.s32.totalorder %s6498_s2, %s5585_s18 }
 0x8d5   : > { %v3588_v26 = vadd.f32 %v6422_v37, %v4131_v35  ;;  %v3591_v30 = vadd.f32 %v6424_v7, %v4131_v35  ;;  %p5582_p5 = pnand %p5581_p10, %p5926_p3  ;;  %p5588_p11 = scmp.lt.s32.totalorder %s5586_s15, %s5580_s19 }
 0x8d6   : > { %s6505_s16 = scalar_lea.hbm %s6609_s0, %s4214_s29 }
 0x8d7   : > { %v3629_v31 = vadd.f32 %v4518_v27, %v3588_v26  ;;  %v3632_v16 = vadd.f32 %v4521_v4, %v3591_v30  ;;  %p5583_p9 = pneg %p5582_p5  ;;  %p5589_p7 = por %p5588_p11, %p5587_p8 }
 0x8d9   : > { %v3670_v40 = vadd.f32 %v6435_v62, %v3629_v31  ;;  %v3673_v10 = vadd.f32 %v6437_v63, %v3632_v16  ;;  %p5590_p12 = pnand %p5589_p7, %p5583_p9 }
 0x8e7   : > { %v4560_v11 = vpop.f32.mrb[28].mxu1 }
 0x8e8   : > { %v4561_v41 = vpop.f32.mrb[29].mxu1 }
 0x8e9   : > { %v4562_v43 = vadd.f32 %v4561_v41, %v4560_v11  ;;  %v4563_v47 = vpop.f32.mrb[30].mxu1 }
 0x8ea   : > { %v4564_v37 = vpop.f32.mrb[31].mxu1 }
 0x8eb   : > { %v3711_v49 = vadd.f32 %v4562_v43, %v3670_v40  ;;  %v4565_v42 = vadd.f32 %v4564_v37, %v4563_v47 }
 0x8ed   : > { %v3752_v44 = vadd.f32 %v6431_v12, %v3711_v49  ;;  %v3714_v7 = vadd.f32 %v4565_v42, %v3673_v10 }
 0x8ef   : > { %v3758_v45 = vmax.f32 %v3752_v44, 0.0  ;;  %v3755_v46 = vadd.f32 %v6433_v57, %v3714_v7 }
 0x8f1   : > { %3760 = vst [vmem:[%s540_s17] sm:$0xff] %v3758_v45  ;;  %v3759_v20 = vmax.f32 %v3755_v46, 0.0 }
 0x8f3   : > { %3761 = vst [vmem:[%s540_s17 + $0x8] sm:$0xff] %v3759_v20 }
 0x8f4   : > { %5593 = shalt.err (!%p5590_p12)
}
 0x8f5   : > { %s5594_s25 = scalar_lea.hbm %s6505_s16, 256  ;;  %s5598_s13 = scalar_lea.hbm %s6609_s0, 512 }
 0x8f6   : > { %p5595_p1 = scmp.ne.s32.totalorder %s6505_s16, %s5594_s25  ;;  %p5599_p0 = scmp.lt.u32.totalorder %s6505_s16, %s6609_s0 }
 0x8f7   : > { %p5600_p4 = scmp.lt.u32.totalorder %s5598_s13, %s5594_s25  ;;  %p5602_p10 = scmp.lt.u32.totalorder %s5594_s25, %s6505_s16 }
 0x8f8   : > { %p5596_p2 = pnand %p5595_p1, %p5926_p3 }
 0x8f9   : > { %p5601_p6 = por %p5600_p4, %p5599_p0 }
 0x8fa   : > { %p5597_p13 = pneg %p5596_p2 }
 0x8fb   : > { %p5603_p5 = por %p5602_p10, %p5601_p6 }
 0x8fd   : > { %p5604_p9 = pnand %p5603_p5, %p5597_p13 }
 0x8ff   : > { %5607 = shalt.err (!%p5604_p9)
}
 0x900   : > { %4892 = dma.vmem_to_hbm [thread:$0]  (%p5926_p3), %s6498_s2, 256, %s6505_s16, %s3768_s11, %s5685_s3, %s5685_s3, %s5679_s27  }
 0x901 PF: > { %s6610_s20 = sld [smem:[#allocation25_spill]]  ;;  %s6611_s19 = sld [smem:[#allocation26_spill]] }
 0x902   : > { %p6613_p11 = scmp.ge.s32.totalorder %s5666_s24, 2 }
 0x907   : > { %s3812_s28 = sand.u32 1, %s6610_s20   ;;  %p6612_p8 = scmp.ne.s32.totalorder %s6611_s19, 0 }
 0x908   : > { %s3813_s18 = scalar_lea.sflag [#allocation6], %s3812_s28 }
 0x909   : > { %p4916_p7 = pnand %p6613_p11, %p6612_p8 }
 0x90b   : > { %5645 = dma.done.wait (!%p4916_p7), %s3813_s18, 256  }
 0x90c   : > { %5647 = vsyncadd (!%p4916_p7), %s3813_s18, 4294967040  ;;  %s3822_s14 = scalar_lea.sflag [#allocation17], %s3812_s28 }
 0x90d   : > { %5649 = dma.done.wait (!%p4916_p7), %s3822_s14, 256  }
 0x90e   : > { %5651 = vsyncadd (!%p4916_p7), %s3822_s14, 4294967040  ;;  %p34_p3 = scmp.ge.s32.totalorder %s5913_s9, 4   ;;  %s6614_s21 = smov %s5658_s22 }
 0x90f   : > { %s6615_s22 = smov %s5662_s23  ;;  %s6616_s23 = smov %s5922_s26 }
 0x910   : > { %s6617_s24 = smov %s5913_s9  ;;  %36 = sbr.rel (!%p34_p3) target bundleno = 19 (0x13), region = 155 }
 0x917   :  { %3827 = vsyncpa [#allocation5], 1 }
 0x918   :  { %3829 = vsyncpa [#allocation5 + $0x1], 1 }
 0x919   :  { %3830 = vsyncpa [#allocation8], 1 }
 0x91a   :  { %3832 = vsyncpa [#allocation8 + $0x1], 1 }
 0x91b   :  { %3833 = vsyncpa [#allocation11], 1 }
 0x91c   :  { %3834 = vsyncpa [#allocation14], 1 }
 0x91d   :  { %3835 = vsyncpa [#allocation6], 1 }
 0x91e   :  { %3837 = vsyncpa [#allocation6 + $0x1], 1 }
 0x91f   :  { %3838 = vsyncpa [#allocation17], 1 }
 0x920   :  { %3840 = vsyncpa [#allocation17 + $0x1], 1 }

</bundles_post_ra>
